<compile_context>
chip_gen: v5e
topology: v5e:2x2
jax: 0.10.0
libtpu: 0.0.40
codegen_flags: <defaults>
</compile_context>

<pallas_src>
import jax
import jax.numpy as jnp
from jax.experimental import pallas as pl
from jax.experimental.pallas import tpu as pltpu


def _mish_kernel(x_ref, o_ref):
    xf = x_ref[...].astype(jnp.float32)
    # tanh(softplus(x)) == (e^2 + 2e) / (e^2 + 2e + 2) with e = exp(x).
    # Clamp the exponent so e^2 cannot overflow in f32; for x > 20 the ratio
    # is exactly 1.0 in f32, handled by the final where().
    e = jnp.exp(jnp.minimum(xf, 20.0))           # 1 EUP transcendental
    num = e * (e + 2.0)
    den = num + 2.0                              # den >= 2, never zero
    r = pl.reciprocal(den, approx=True)          # 1 EUP push (approx)
    r = r * (2.0 - den * r)                      # Newton step (VPU, ~free)
    r = r * (2.0 - den * r)                      # 2nd Newton step -> full f32 acc.
    y = xf * (num * r)
    y = jnp.where(xf > 20.0, xf, y)              # large-x guard: tanh(sp(x)) == 1
    o_ref[...] = y.astype(o_ref.dtype)


def _mish_jnp(x):
    xf = x.astype(jnp.float32)
    return (xf * jnp.tanh(jax.nn.softplus(xf))).astype(x.dtype)


# Below this element count the ravel/reshape plumbing + pallas_call launch
# overhead dominates; a fused XLA elementwise op is strictly better.
_SMALL_N_FAST_PATH = 1 << 16


def mish_pallas(x):
    """Elementwise Mish on an arbitrary-shaped array via a Pallas TPU kernel."""
    orig_shape = x.shape
    dtype = x.dtype
    n = x.size

    if n == 0:
        return x
    if n < _SMALL_N_FAST_PATH:
        return _mish_jnp(x)

    itemsize = jnp.dtype(dtype).itemsize
    # Sublane packing multiple: f32 -> 8, bf16 -> 16, int8/fp8 -> 32.
    sub_mult = max(8, 32 // max(int(itemsize), 1))

    # Generation-aware block / VMEM limits (conservative default is v7x-safe).
    max_block_rows = 2048                # 2048 x 512 f32 = 4 MiB / buffer
    vmem_limit = 32 * 1024 * 1024
    try:
        info = pltpu.get_tpu_info()
        if getattr(info, "vmem_capacity_bytes", 0) >= 100 * 1024 * 1024:
            max_block_rows = 4096        # v5e / v6e: 128 MiB physical VMEM
            vmem_limit = 64 * 1024 * 1024
    except Exception:
        pass

    x_flat = jnp.ravel(x)

    # Pick the widest lane width (multiple of 128) that divides n exactly so
    # no padding / slicing copies are needed; pad only as a rare fallback.
    lane_w = None
    for cand in (512, 256, 128):
        if n % cand == 0:
            lane_w = cand
            break
    if lane_w is None:
        lane_w = 512
        rows = pl.cdiv(n, lane_w)
        x_flat = jnp.pad(x_flat, (0, rows * lane_w - n))   # mish(0) == 0
        padded = True
    else:
        rows = n // lane_w
        padded = False
    x2d = x_flat.reshape(rows, lane_w)

    # Choose block count: enough blocks to cover VMEM limits, and >=2 (even)
    # so a ("parallel",) grid shards across both v7x TensorCores.
    num_blocks = pl.cdiv(rows, max_block_rows)
    if rows >= 2 * sub_mult:
        num_blocks = max(num_blocks, 2)
        if num_blocks % 2:
            num_blocks += 1
    block_rows = ((pl.cdiv(rows, num_blocks) + sub_mult - 1) // sub_mult) * sub_mult
    grid = pl.cdiv(rows, block_rows)     # partial last block is masked by Pallas

    total = rows * lane_w
    cost = pl.CostEstimate(
        flops=8 * total,
        transcendentals=2 * total,
        bytes_accessed=2 * total * int(itemsize),
    )

    out2d = pl.pallas_call(
        _mish_kernel,
        out_shape=jax.ShapeDtypeStruct((rows, lane_w), dtype),
        grid_spec=pltpu.PrefetchScalarGridSpec(
            num_scalar_prefetch=0,
            grid=(grid,),
            in_specs=[pl.BlockSpec((block_rows, lane_w), lambda i: (i, 0))],
            out_specs=pl.BlockSpec((block_rows, lane_w), lambda i: (i, 0)),
        ),
        compiler_params=pltpu.CompilerParams(
            dimension_semantics=("parallel",),   # megacore-shardable on v7x
            vmem_limit_bytes=vmem_limit,
        ),
        cost_estimate=cost,
    )(x2d)

    out_flat = out2d.reshape(-1)
    if padded:
        out_flat = out_flat[:n]
    return out_flat.reshape(orig_shape)


if __name__ == "__main__":
    key = jax.random.PRNGKey(0)
    k1, k2, k3 = jax.random.split(key, 3)

    # 1) Spec shape from CSPdarknet usage (tiny -> fused-XLA fast path).
    x_small = jax.random.normal(k1, (2, 4, 16, 16), dtype=jnp.float32)
    y_small = mish_pallas(x_small)
    jax.block_until_ready(y_small)
    assert y_small.shape == x_small.shape and y_small.dtype == x_small.dtype
    assert jnp.allclose(y_small, _mish_jnp(x_small), atol=1e-5, rtol=1e-5)

    # 2) Larger activation map -> exercises the Pallas kernel (even grid, no pad).
    x_big = jax.random.normal(k2, (2, 16, 64, 64), dtype=jnp.float32) * 4.0
    y_big = mish_pallas(x_big)
    jax.block_until_ready(y_big)
    assert y_big.shape == x_big.shape and y_big.dtype == x_big.dtype
    assert jnp.allclose(y_big, _mish_jnp(x_big), atol=1e-5, rtol=1e-5)

    # 3) Ragged row count -> exercises the masked partial last block path.
    x_rag = jax.random.normal(k3, (2, 124, 16, 32), dtype=jnp.float32) * 4.0
    y_rag = mish_pallas(x_rag)
    jax.block_until_ready(y_rag)
    assert y_rag.shape == x_rag.shape and y_rag.dtype == x_rag.dtype
    assert jnp.allclose(y_rag, _mish_jnp(x_rag), atol=1e-5, rtol=1e-5)

    print("KERNEL_OK")
</pallas_src>

<mosaic_0001>
module attributes {stable_mosaic.version = 11 : i64} {
  func.func @_mish_kernel(%arg0: i32, %arg1: memref<128x512xf32, #tpu.memory_space<vmem>>, %arg2: memref<128x512xf32, #tpu.memory_space<vmem>>) attributes {dimension_semantics = [#tpu.dimension_semantics<parallel>], iteration_bounds = array<i64: 2>, scalar_prefetch = 0 : i64, scratch_operands = 0 : i64, tpu.core_type = #tpu.core_type<tc>, window_params = [{transform_indices = @transform_0, window_bounds = array<i64: 128, 512>}, {transform_indices = @transform_1, window_bounds = array<i64: 128, 512>}]} {
    %c0 = arith.constant 0 : index
    %c0_0 = arith.constant 0 : index
    %0 = vector.load %arg1[%c0, %c0_0] : memref<128x512xf32, #tpu.memory_space<vmem>>, vector<128x512xf32>
    %cst = arith.constant 2.000000e+01 : f32
    %1 = vector.broadcast %cst : f32 to vector<128x512xf32>
    %2 = arith.minimumf %0, %1 : vector<128x512xf32>
    %3 = math.exp %2 : vector<128x512xf32>
    %cst_1 = arith.constant 2.000000e+00 : f32
    %4 = vector.broadcast %cst_1 : f32 to vector<128x512xf32>
    %5 = arith.addf %3, %4 : vector<128x512xf32>
    %6 = arith.mulf %3, %5 : vector<128x512xf32>
    %cst_2 = arith.constant 2.000000e+00 : f32
    %7 = vector.broadcast %cst_2 : f32 to vector<128x512xf32>
    %8 = arith.addf %6, %7 : vector<128x512xf32>
    %9 = tpu.reciprocal %8 {approx = true} : vector<128x512xf32> -> vector<128x512xf32>
    %10 = arith.mulf %8, %9 : vector<128x512xf32>
    %cst_3 = arith.constant 2.000000e+00 : f32
    %11 = vector.broadcast %cst_3 : f32 to vector<128x512xf32>
    %12 = arith.subf %11, %10 : vector<128x512xf32>
    %13 = arith.mulf %9, %12 : vector<128x512xf32>
    %14 = arith.mulf %8, %13 : vector<128x512xf32>
    %cst_4 = arith.constant 2.000000e+00 : f32
    %15 = vector.broadcast %cst_4 : f32 to vector<128x512xf32>
    %16 = arith.subf %15, %14 : vector<128x512xf32>
    %17 = arith.mulf %13, %16 : vector<128x512xf32>
    %18 = arith.mulf %6, %17 : vector<128x512xf32>
    %19 = arith.mulf %0, %18 : vector<128x512xf32>
    %cst_5 = arith.constant 2.000000e+01 : f32
    %20 = vector.broadcast %cst_5 : f32 to vector<128x512xf32>
    %21 = arith.cmpf ogt, %0, %20 : vector<128x512xf32>
    %22 = arith.select %21, %0, %19 : vector<128x512xi1>, vector<128x512xf32>
    %c0_6 = arith.constant 0 : index
    %c0_7 = arith.constant 0 : index
    %23 = vector.load %arg2[%c0_6, %c0_7] : memref<128x512xf32, #tpu.memory_space<vmem>>, vector<128x512xf32>
    tpu.vector_store %arg2[%c0_6, %c0_7], %22 {strides = array<i32>} : memref<128x512xf32, #tpu.memory_space<vmem>>, vector<128x512xf32>,
    return
  }
  func.func @transform_0(%arg0: i32) -> (i32, i32) {
    %c0_i32 = arith.constant 0 : i32
    %c0_i32_0 = arith.constant 0 : i32
    return %arg0, %c0_i32 : i32, i32
  }
  func.func @transform_1(%arg0: i32) -> (i32, i32) {
    %c0_i32 = arith.constant 0 : i32
    %c0_i32_0 = arith.constant 0 : i32
    return %arg0, %c0_i32 : i32, i32
  }
}

</mosaic_0001>

<bundles_post_ra>
// kernel: tpu_custom_call.1
= control target key start
LH: loop header
LB: loop body
LE: loop exit
PB: predicated region body
PF: predicated region fallthrough
CT: control target
= control target key end

     0   :  { %6 = vsyncpa [#allocation3], 0  ;;  %s3208_s0 = inlined_call_operand.hbm [shape: f32[256,512], index: 0, kind: input, shape index: {}]   ;;  %s3209_s1 = inlined_call_operand.hbm [shape: f32[256,512], index: 1, kind: output, shape index: {}]  }
   0x1   :  { %8 = vsyncpa [#allocation3 + $0x1], 0 }
   0x2   :  { %9 = vsyncpa [#allocation4], 0 }
   0x3   :  { %11 = vsyncpa [#allocation4 + $0x1], 0  ;;  %s1884_s6 = smov 0   ;;  %s1886_s7 = smov 0  }
   0x4   :  { %s1888_s8 = smov 0   ;;  %s1890_s9 = smov 0  }
   0x5 LB: > { %s1905_s10 = sadd.s32 4294967295, %s1868_s9   ;;  %s1446_s11 = sadd.s32 4294967294, %s1868_s9   ;;  %s1868_s9 = sphi %s1890_s9, %s3235_s9   ;;  %s1864_s8 = sphi %s1888_s8, %s3234_s8   ;;  %s1860_s7 = sphi %s1886_s7, %s3233_s7   ;;  %s1856_s6 = sphi %s1884_s6, %s3232_s6  }
   0x6   : > { %s1909_s12 = sadd.s32 1, %s1868_s9   ;;  %s24_s13 = sadd.s32 1, %s1864_s8 }
   0x7   : > { %s21_s14 = ssub.s32 %s1868_s9, %s1909_s12  ;;  %p31_p0 = scmp.ne.s32.totalorder %s1864_s8, %s1860_s7 }
   0x8   : > { %p22_p1 = scmp.eq.s32.totalorder %s21_s14, 0  ;;  %p32_p2 = scmp.eq.s32.totalorder %s1868_s9, 0 }
   0x9   : > { %p37_p3 = scmp.ne.s32.totalorder %s1860_s7, %s1856_s6  ;;  %p38_p4 = scmp.eq.s32.totalorder %s1905_s10, 0 }
   0xa   : > { %s1921_s15 = scalar_select %p22_p1, %s1864_s8, %s24_s13  }
   0xb   : > { %p1923_p5 = por %p32_p2, %p31_p0  ;;  %p1927_p6 = por %p38_p4, %p37_p3 }
   0xc   : > { %p61_p7 = scmp.eq.s32.totalorder %s1905_s10, 1  ;;  %p67_p8 = scmp.eq.s32.totalorder %s1446_s11, 1 }
   0xd   : > { %p1478_p10 = scmp.lt.s32.totalorder %s1868_s9, 2  ;;  %s87_s20 = sand.u32 1, %s1864_s8  }
   0xe   : > { %p1934_p11 = por %p61_p7, %p31_p0  ;;  %p1938_p12 = por %p67_p8, %p37_p3 }
   0xf   : > { %s1463_s21 = sshll.u32 %s1868_s9, 9  ;;  %s1449_s22 = sshll.u32 %s87_s20, 9 }
  0x10   : > { %s97_s25 = scalar_lea.hbm %s3208_s0, %s1463_s21  ;;  %s91_s27 = scalar_lea.vmem [#allocation2], %s1449_s22 }
  0x11   : > { %s98_s26 = sshll.u32 %s97_s25, 4  ;;  %s100_s28 = sshll.u32 %s91_s27, 4  ;;  %s99_s26 = int_to_ptr.hbm [resolvable:$true] %s98_s26  ;;  %s101_s28 = int_to_ptr.vmem [resolvable:$true] %s100_s28 }
  0x12   : > { %p1949_p13 = pnand %p1478_p10, %p1923_p5  ;;  %p1453_p0 = scmp.ge.s32.totalorder %s1868_s9, 1 }
  0x13   : > { %p108_p1 = scmp.lt.s32.totalorder %s1868_s9, 3  ;;  %s88_s30 = scalar_lea.sflag [#allocation3], %s87_s20 }
  0x14   : > { %s1772_s2 = sshra.s32 %s99_s26, 4  ;;  %p1776_p3 = pneg %p1949_p13  ;;  %s1773_s2 = int_to_ptr.hbm [resolvable:$true] %s1772_s2 }
  0x15   : > { %s1774_s3 = scalar_lea.hbm %s1773_s2, 512  ;;  %s1779_s11 = scalar_lea.hbm %s3208_s0, 1024 }
  0x16   : > { %p1775_p2 = scmp.ne.s32.totalorder %s1773_s2, %s1774_s3  ;;  %p1780_p5 = scmp.lt.s32.totalorder %s1773_s2, %s3208_s0 }
  0x17   : > { %p1781_p8 = scmp.lt.s32.totalorder %s1779_s11, %s1774_s3 }
  0x18   : > { %p1777_p4 = pnand %p1776_p3, %p1775_p2 }
  0x19   : > { %p1782_p10 = por %p1781_p8, %p1780_p5 }
  0x1a   : > { %p1778_p7 = pneg %p1777_p4 }
  0x1c   : > { %p1783_p9 = pnand %p1782_p10, %p1778_p7 }
  0x1e   : > { %1786 = shalt.err (!%p1783_p9)
}
  0x1f   : > { %s1870_s16 = smov 512   ;;  %s1871_s20 = smov 32  }
  0x20   : > { %1473 = dma.hbm_to_vmem [thread:$0]  (!%p1949_p13), %s99_s26, 8192, %s101_s28, %s88_s30, %s1870_s16, %s1870_s16, %s1871_s20  }
  0x21   : > { %p109_p2 = pnand %p1453_p0, %p108_p1 }
  0x23   : > { %112 = sbr.rel (%p109_p2) target bundleno = 337 (0x151), region = 24 }
  0x28   : > { %s1970_s21 = sand.u32 1, %s1860_s7  }
  0x29   : > { %s1454_s22 = sshll.u32 %s1970_s21, 9  ;;  %s115_s23 = scalar_lea.sflag [#allocation3], %s1970_s21 }
  0x2a   : > { %s1976_s24 = scalar_lea.vmem [#allocation2], %s1454_s22 }
  0x2b   : > { %1847 = dma.done.wait (%p1927_p6), %s115_s23, 8192  }
  0x2c   : > { %1849 = vsyncadd (%p1927_p6), %s115_s23, 4294959104  ;;  %v1983_v0 = vld [vmem:[%s1976_s24] sm:$0xff]  ;;  %v1986_v1 = vld [vmem:[%s1976_s24 + $0x8] sm:$0xff]  ;;  %s2160_s17 = scalar_lea.vmem [#allocation5], %s1454_s22  ;;  %s1465_s25 = sshll.u32 %s1905_s10, 9 }
  0x2d   : > { %v1989_v2 = vld [vmem:[%s1976_s24 + $0x10] sm:$0xff]  ;;  %v204_v3 = vmin.f32 %v1983_v0, 20.0  ;;  %v205_v4 = vmin.f32 %v1986_v1, 20.0  ;;  %v1995_v6 = vld [vmem:[%s1976_s24 + $0x18] sm:$0xff]  ;;  %v1998_v7 = vld [vmem:[%s1976_s24 + $0x20] sm:$0xff]  ;;  %vm1164_vm0 = vcmp.gt.f32.partialorder %v1983_v0, 20.0  ;;  %s1369_s28 = scalar_lea.hbm %s3209_s1, %s1465_s25 }
  0x2e   : > { %v206_v5 = vmin.f32 %v1989_v2, 20.0  ;;  %v2001_v8 = vld [vmem:[%s1976_s24 + $0x28] sm:$0xff]  ;;  %v207_v9 = vmin.f32 %v1995_v6, 20.0  ;;  %v208_v10 = vmin.f32 %v1998_v7, 20.0  ;;  %v2007_v12 = vld [vmem:[%s1976_s24 + $0x30] sm:$0xff]  ;;  %v2010_v13 = vld [vmem:[%s1976_s24 + $0x38] sm:$0xff] }
  0x2f   : > { %v209_v11 = vmin.f32 %v2001_v8, 20.0  ;;  %v2013_v14 = vld [vmem:[%s1976_s24 + $0x40] sm:$0xff]  ;;  %v268_v15 = vmul.f32 1.442695, %v204_v3  ;;  %v270_v16 = vmul.f32 1.442695, %v205_v4 }
  0x30   : > { %v272_v17 = vmul.f32 1.442695, %v206_v5  ;;  %v274_v18 = vmul.f32 1.442695, %v207_v9  ;;  %v276_v19 = vmul.f32 1.442695, %v208_v10 }
  0x31   : > { %1516 = vpow2.f32 %v268_v15  ;;  %v210_v20 = vmin.f32 %v2007_v12, 20.0  ;;  %v211_v21 = vmin.f32 %v2010_v13, 20.0  ;;  %v212_v22 = vmin.f32 %v2013_v14, 20.0  ;;  %v2019_v23 = vld [vmem:[%s1976_s24 + $0x48] sm:$0xff]  ;;  %v2022_v24 = vld [vmem:[%s1976_s24 + $0x50] sm:$0xff]  ;;  %v2025_v25 = vld [vmem:[%s1976_s24 + $0x58] sm:$0xff] }
  0x32   : > { %3222 = vst [vmem:[#allocation8_spill] sm:$0xff] %v2025_v25  ;;  %1518 = vpow2.f32 %v270_v16  ;;  %v278_v26 = vmul.f32 1.442695, %v209_v11  ;;  %v213_v27 = vmin.f32 %v2019_v23, 20.0  ;;  %v2029_v28 = vld [vmem:[%s1976_s24 + $0x60] sm:$0xff]  ;;  %v214_v30 = vmin.f32 %v2022_v24, 20.0 }
  0x33   : > { %3223 = vst [vmem:[#allocation9_spill] sm:$0xff] %v2029_v28  ;;  %1520 = vpow2.f32 %v272_v17  ;;  %v280_v29 = vmul.f32 1.442695, %v210_v20  ;;  %v282_v31 = vmul.f32 1.442695, %v211_v21  ;;  %v215_v32 = vmin.f32 %v2025_v25, 20.0 }
  0x34   : > { %1522 = vpow2.f32 %v274_v18  ;;  %v284_v33 = vmul.f32 1.442695, %v212_v22  ;;  %v216_v34 = vmin.f32 %v2029_v28, 20.0  ;;  %v286_v35 = vmul.f32 1.442695, %v213_v27  ;;  %v2035_v41 = vld [vmem:[%s1976_s24 + $0x68] sm:$0xff] }
  0x35   : > { %1524 = vpow2.f32 %v276_v19  ;;  %v288_v37 = vmul.f32 1.442695, %v214_v30  ;;  %v290_v40 = vmul.f32 1.442695, %v215_v32  ;;  %3224 = vst [vmem:[#allocation10_spill] sm:$0xff] %v2035_v41  ;;  %v217_v51 = vmin.f32 %v2035_v41, 20.0 }
  0x36   : > { %1526 = vpow2.f32 %v278_v26  ;;  %v292_v44 = vmul.f32 1.442695, %v216_v34  ;;  %vm1165_vm1 = vcmp.gt.f32.partialorder %v1986_v1, 20.0  ;;  %vm1166_vm2 = vcmp.gt.f32.partialorder %v1989_v2, 20.0  ;;  %s1370_s10 = sshll.u32 %s2160_s17, 4  ;;  %s1372_s29 = sshll.u32 %s1369_s28, 4  ;;  %s1371_s10 = int_to_ptr.vmem [resolvable:$true] %s1370_s10  ;;  %s1373_s29 = int_to_ptr.hbm [resolvable:$true] %s1372_s29 }
  0x37   : > { %v1517_v36 = vpop.eup %1516  ;;  %1528 = vpow2.f32 %v280_v29  ;;  %vm1167_vm3 = vcmp.gt.f32.partialorder %v1995_v6, 20.0  ;;  %vm1168_vm4 = vcmp.gt.f32.partialorder %v1998_v7, 20.0  ;;  %vm1169_vm5 = vcmp.gt.f32.partialorder %v2001_v8, 20.0  ;;  %s1357_s30 = scalar_lea.sflag [#allocation4], %s1970_s21  ;;  %s1816_s2 = sshra.s32 %s1373_s29, 4  ;;  %s1817_s2 = int_to_ptr.hbm [resolvable:$true] %s1816_s2 }
  0x38   : > { %v1519_v38 = vpop.eup %1518  ;;  %v396_v39 = vadd.f32 2.0, %v1517_v36  ;;  %1530 = vpow2.f32 %v282_v31  ;;  %vm1170_vm6 = vcmp.gt.f32.partialorder %v2007_v12, 20.0  ;;  %vm1171_vm7 = vcmp.gt.f32.partialorder %v2010_v13, 20.0  ;;  %s1818_s3 = scalar_lea.hbm %s1817_s2, 512  ;;  %s1822_s11 = scalar_lea.hbm %s3209_s1, 1024 }
  0x39   : > { %v1521_v42 = vpop.eup %1520  ;;  %v397_v43 = vadd.f32 2.0, %v1519_v38  ;;  %1532 = vpow2.f32 %v284_v33  ;;  %vm1172_vm8 = vcmp.gt.f32.partialorder %v2013_v14, 20.0  ;;  %vm1173_vm9 = vcmp.gt.f32.partialorder %v2019_v23, 20.0  ;;  %p1819_p6 = scmp.ne.s32.totalorder %s1817_s2, %s1818_s3  ;;  %p1823_p0 = scmp.lt.s32.totalorder %s1817_s2, %s3209_s1 }
  0x3a   : > { %v1523_v45 = vpop.eup %1522  ;;  %v2037_v46 = vmul.f32 %v1517_v36, %v396_v39  ;;  %v398_v47 = vadd.f32 2.0, %v1521_v42  ;;  %1534 = vpow2.f32 %v286_v35  ;;  %vm1174_vm10 = vcmp.gt.f32.partialorder %v2022_v24, 20.0  ;;  %p1824_p1 = scmp.lt.s32.totalorder %s1822_s11, %s1818_s3 }
  0x3b   : > { %v1525_v48 = vpop.eup %1524  ;;  %v2039_v49 = vmul.f32 %v1519_v38, %v397_v43  ;;  %v399_v50 = vadd.f32 2.0, %v1523_v45  ;;  %1536 = vpow2.f32 %v288_v37  ;;  %p1820_p9 = pnand %p1819_p6, %p1934_p11 }
  0x3c   : > { %v1527_v52 = vpop.eup %1526  ;;  %v2043_v53 = vadd.f32 2.0, %v2037_v46  ;;  %v2045_v54 = vmul.f32 %v1521_v42, %v398_v47  ;;  %v400_v55 = vadd.f32 2.0, %v1525_v48  ;;  %1538 = vpow2.f32 %v290_v40  ;;  %v2100_v40 = vld [vmem:[%s1976_s24 + $0x70] sm:$0xff]  ;;  %p1825_p3 = por %p1824_p1, %p1823_p0 }
  0x3d   : > { %v1529_v56 = vpop.eup %1528  ;;  %v2048_v57 = vadd.f32 2.0, %v2039_v49  ;;  %v2050_v58 = vmul.f32 %v1523_v45, %v399_v50  ;;  %v401_v59 = vadd.f32 2.0, %v1527_v52  ;;  %1540 = vpow2.f32 %v292_v44  ;;  %p1821_p13 = pneg %p1820_p9 }
  0x3e   : > { %v1531_v60 = vpop.eup %1530  ;;  %1542 = vrcp.f32 %v2043_v53  ;;  %v2054_v61 = vadd.f32 2.0, %v2045_v54  ;;  %v2056_v62 = vmul.f32 %v1525_v48, %v400_v55  ;;  %v402_v63 = vadd.f32 2.0, %v1529_v56 }
  0x3f   : > { %v1533_v3 = vpop.eup %1532  ;;  %1544 = vrcp.f32 %v2048_v57  ;;  %v2060_v4 = vadd.f32 2.0, %v2050_v58  ;;  %v2062_v5 = vmul.f32 %v1527_v52, %v401_v59  ;;  %v403_v9 = vadd.f32 2.0, %v1531_v60  ;;  %p1826_p4 = pnand %p1825_p3, %p1821_p13 }
  0x40   : > { %v1535_v10 = vpop.eup %1534  ;;  %1546 = vrcp.f32 %v2054_v61  ;;  %v2066_v11 = vadd.f32 2.0, %v2056_v62  ;;  %v2068_v15 = vmul.f32 %v1529_v56, %v402_v63  ;;  %v404_v16 = vadd.f32 2.0, %v1533_v3 }
  0x41   : > { %v1537_v17 = vpop.eup %1536  ;;  %1548 = vrcp.f32 %v2060_v4  ;;  %v2072_v18 = vadd.f32 2.0, %v2062_v5  ;;  %v2074_v19 = vmul.f32 %v1531_v60, %v403_v9  ;;  %v405_v20 = vadd.f32 2.0, %v1535_v10 }
  0x42   : > { %v1539_v21 = vpop.eup %1538  ;;  %1550 = vrcp.f32 %v2066_v11  ;;  %v2078_v22 = vadd.f32 2.0, %v2068_v15  ;;  %v2080_v26 = vmul.f32 %v1533_v3, %v404_v16  ;;  %v406_v27 = vadd.f32 2.0, %v1537_v17 }
  0x43   : > { %v1541_v29 = vpop.eup %1540  ;;  %1552 = vrcp.f32 %v2072_v18  ;;  %v2084_v30 = vadd.f32 2.0, %v2074_v19  ;;  %v2086_v31 = vmul.f32 %v1535_v10, %v405_v20  ;;  %v407_v32 = vadd.f32 2.0, %v1539_v21 }
  0x44   : > { %v1543_v33 = vpop.eup %1542  ;;  %1554 = vrcp.f32 %v2078_v22  ;;  %v2090_v34 = vadd.f32 2.0, %v2080_v26  ;;  %v2092_v35 = vmul.f32 %v1537_v17, %v406_v27  ;;  %v408_v39 = vadd.f32 2.0, %v1541_v29 }
  0x45   : > { %v1545_v36 = vpop.eup %1544  ;;  %v652_v37 = vmul.f32 %v1543_v33, %v2043_v53  ;;  %1556 = vrcp.f32 %v2084_v30  ;;  %v2097_v38 = vadd.f32 2.0, %v2086_v31  ;;  %v2107_v45 = vmul.f32 %v1539_v21, %v407_v32 }
  0x46   : > { %v1547_v42 = vpop.eup %1546  ;;  %v653_v43 = vmul.f32 %v1545_v36, %v2048_v57  ;;  %1558 = vrcp.f32 %v2090_v34  ;;  %v2105_v44 = vadd.f32 2.0, %v2092_v35  ;;  %v2111_v52 = vmul.f32 1.442695, %v217_v51 }
  0x47   : > { %3225 = vst [vmem:[#allocation11_spill] sm:$0xff] %v2107_v45  ;;  %v1549_v47 = vpop.eup %1548  ;;  %v716_v48 = vsub.f32 2.0, %v652_v37  ;;  %v654_v50 = vmul.f32 %v1547_v42, %v2054_v61  ;;  %1560 = vrcp.f32 %v2097_v38  ;;  %v2118_v16 = vadd.f32 2.0, %v2107_v45 }
  0x48   : > { %v1551_v55 = vpop.eup %1550  ;;  %v717_v56 = vsub.f32 2.0, %v653_v43  ;;  %v655_v59 = vmul.f32 %v1549_v47, %v2060_v4  ;;  %1562 = vrcp.f32 %v2105_v44  ;;  %v2122_v27 = vmul.f32 %v1541_v29, %v408_v39 }
  0x49   : > { %v1553_v63 = vpop.eup %1552  ;;  %v780_v3 = vmul.f32 %v1543_v33, %v716_v48  ;;  %v718_v9 = vsub.f32 2.0, %v654_v50  ;;  %v656_v10 = vmul.f32 %v1551_v55, %v2066_v11  ;;  %1564 = vrcp.f32 %v2118_v16 }
  0x4a   : > { %v1555_v17 = vpop.eup %1554  ;;  %v781_v51 = vmul.f32 %v1545_v36, %v717_v56  ;;  %v719_v20 = vsub.f32 2.0, %v655_v59  ;;  %v657_v21 = vmul.f32 %v1553_v63, %v2072_v18  ;;  %1566 = vpow2.f32 %v2111_v52 }
  0x4b   : > { %v1557_v32 = vpop.eup %1556  ;;  %v844_v37 = vmul.f32 %v780_v3, %v2043_v53  ;;  %v782_v33 = vmul.f32 %v1547_v42, %v718_v9  ;;  %v720_v43 = vsub.f32 2.0, %v656_v10  ;;  %v658_v48 = vmul.f32 %v1555_v17, %v2078_v22 }
  0x4c   : > { %v2127_v50 = vpop.eup %1558  ;;  %v845_v60 = vmul.f32 %v781_v51, %v2048_v57  ;;  %v783_v36 = vmul.f32 %v1549_v47, %v719_v20  ;;  %v721_v56 = vsub.f32 2.0, %v657_v21  ;;  %v659_v29 = vmul.f32 %v1557_v32, %v2084_v30 }
  0x4d   : > { %v2132_v39 = vpop.eup %1560  ;;  %v908_v59 = vsub.f32 2.0, %v844_v37  ;;  %v846_v53 = vmul.f32 %v782_v33, %v2054_v61  ;;  %v784_v42 = vmul.f32 %v1551_v55, %v720_v43  ;;  %v722_v9 = vsub.f32 2.0, %v658_v48 }
  0x4e   : > { %v2136_v10 = vpop.eup %1562  ;;  %v909_v41 = vsub.f32 2.0, %v845_v60  ;;  %v847_v57 = vmul.f32 %v783_v36, %v2060_v4  ;;  %v785_v47 = vmul.f32 %v1553_v63, %v721_v56  ;;  %v723_v20 = vsub.f32 2.0, %v659_v29 }
  0x4f   : > { %v972_v21 = vmul.f32 %v908_v59, %v780_v3  ;;  %v910_v28 = vsub.f32 2.0, %v846_v53  ;;  %v848_v45 = vmul.f32 %v784_v42, %v2066_v11  ;;  %v786_v61 = vmul.f32 %v1555_v17, %v722_v9 }
  0x50   : > { %v973_v37 = vmul.f32 %v909_v41, %v781_v51  ;;  %v911_v25 = vsub.f32 2.0, %v847_v57  ;;  %v849_v55 = vmul.f32 %v785_v47, %v2072_v18  ;;  %v787_v60 = vmul.f32 %v1557_v32, %v723_v20 }
  0x51   : > { %v1036_v4 = vmul.f32 %v972_v21, %v2037_v46  ;;  %v974_v43 = vmul.f32 %v910_v28, %v782_v33  ;;  %v912_v48 = vsub.f32 2.0, %v848_v45  ;;  %v850_v63 = vmul.f32 %v786_v61, %v2078_v22 }
  0x52   : > { %v1037_v11 = vmul.f32 %v973_v37, %v2039_v49  ;;  %v975_v3 = vmul.f32 %v911_v25, %v783_v36  ;;  %v913_v17 = vsub.f32 2.0, %v849_v55  ;;  %v851_v41 = vmul.f32 %v787_v60, %v2084_v30  ;;  %v2203_v37 = vld [vmem:[%s1976_s24 + $0x78] sm:$0xff]  ;;  %v2206_v55 = vld [vmem:[%s1976_s24 + $0x80] sm:$0xff] }
  0x53   : > { %v1100_v18 = vmul.f32 %v1036_v4, %v1983_v0  ;;  %v1038_v51 = vmul.f32 %v974_v43, %v2045_v54  ;;  %v976_v32 = vmul.f32 %v912_v48, %v784_v42  ;;  %v914_v56 = vsub.f32 2.0, %v850_v63  ;;  %v2223_v63 = vld [vmem:[%s1976_s24 + $0x88] sm:$0xff] }
  0x54   : > { %v1101_v28 = vmul.f32 %v1037_v11, %v1986_v1  ;;  %v1039_v46 = vmul.f32 %v975_v3, %v2050_v58  ;;  %v977_v22 = vmul.f32 %v913_v17, %v785_v47  ;;  %v915_v45 = vsub.f32 2.0, %v851_v41 }
  0x55   : > { %v1228_v49 = vsel %vm1164_vm0, %v1983_v0, %v1100_v18  ;;  %v1102_v25 = vmul.f32 %v1038_v51, %v1989_v2  ;;  %v1040_v30 = vmul.f32 %v976_v32, %v2056_v62  ;;  %v978_v33 = vmul.f32 %v914_v56, %v786_v61 }
  0x56   : > { %1292 = vst [vmem:[%s2160_s17] sm:$0xff] %v1228_v49  ;;  %v1229_v54 = vsel %vm1165_vm1, %v1986_v1, %v1101_v28  ;;  %v1103_v58 = vmul.f32 %v1039_v46, %v1995_v6  ;;  %v1041_v0 = vmul.f32 %v977_v22, %v2062_v5  ;;  %v979_v36 = vmul.f32 %v915_v45, %v787_v60  ;;  %v2236_v49 = vld [vmem:[%s1976_s24 + $0x90] sm:$0xff] }
  0x57   : > { %1293 = vst [vmem:[%s2160_s17 + $0x8] sm:$0xff] %v1229_v54  ;;  %v1230_v62 = vsel %vm1166_vm2, %v1989_v2, %v1102_v25  ;;  %v1104_v29 = vmul.f32 %v1040_v30, %v1998_v7  ;;  %v1042_v59 = vmul.f32 %v978_v33, %v2068_v15  ;;  %v660_v53 = vmul.f32 %v2127_v50, %v2090_v34 }
  0x58   : > { %1294 = vst [vmem:[%s2160_s17 + $0x10] sm:$0xff] %v1230_v62  ;;  %v1231_v1 = vsel %vm1167_vm3, %v1995_v6, %v1103_v58  ;;  %v1105_v5 = vmul.f32 %v1041_v0, %v2001_v8  ;;  %v1043_v42 = vmul.f32 %v979_v36, %v2074_v19  ;;  %v661_v2 = vmul.f32 %v2132_v39, %v2097_v38 }
  0x59   : > { %1295 = vst [vmem:[%s2160_s17 + $0x18] sm:$0xff] %v1231_v1  ;;  %v1232_v15 = vsel %vm1168_vm4, %v1998_v7, %v1104_v29  ;;  %v1106_v9 = vmul.f32 %v1042_v59, %v2007_v12  ;;  %v724_v57 = vsub.f32 2.0, %v660_v53  ;;  %v662_v6 = vmul.f32 %v2136_v10, %v2105_v44 }
  0x5a   : > { %1296 = vst [vmem:[%s2160_s17 + $0x20] sm:$0xff] %v1232_v15  ;;  %v1233_v19 = vsel %vm1169_vm5, %v2001_v8, %v1105_v5  ;;  %v1107_v47 = vmul.f32 %v1043_v42, %v2010_v13  ;;  %v725_v20 = vsub.f32 2.0, %v661_v2  ;;  %v2214_v4 = vadd.f32 2.0, %v2122_v27  ;;  %v3227_v15 = vld [vmem:[#allocation8_spill] sm:$0xff] }
  0x5b   : > { %1297 = vst [vmem:[%s2160_s17 + $0x28] sm:$0xff] %v1233_v19  ;;  %v1234_v7 = vsel %vm1170_vm6, %v2007_v12, %v1106_v9  ;;  %v788_v21 = vmul.f32 %v2127_v50, %v724_v57  ;;  %v726_v61 = vsub.f32 2.0, %v662_v6  ;;  %v3226_v43 = vmin.f32 %v2100_v40, 20.0 }
  0x5c   : > { %1298 = vst [vmem:[%s2160_s17 + $0x30] sm:$0xff] %v1234_v7  ;;  %v1235_v8 = vsel %vm1171_vm7, %v2010_v13, %v1107_v47  ;;  %v789_v60 = vmul.f32 %v2132_v39, %v725_v20  ;;  %1568 = vrcp.f32 %v2214_v4  ;;  %v219_v13 = vmin.f32 %v2203_v37, 20.0  ;;  %v2267_v20 = vld [vmem:[%s1976_s24 + $0x98] sm:$0xff]  ;;  %v2270_v7 = vld [vmem:[%s1976_s24 + $0xa0] sm:$0xff] }
  0x5d   : > { %1299 = vst [vmem:[%s2160_s17 + $0x38] sm:$0xff] %v1235_v8  ;;  %v852_v12 = vmul.f32 %v788_v21, %v2090_v34  ;;  %v790_v50 = vmul.f32 %v2136_v10, %v726_v61  ;;  %v296_v48 = vmul.f32 1.442695, %v3226_v43  ;;  %v220_v39 = vmin.f32 %v2206_v55, 20.0  ;;  %v1565_v10 = vpop.eup %1564 }
  0x5e   : > { %v853_v11 = vmul.f32 %v789_v60, %v2097_v38  ;;  %v298_v52 = vmul.f32 1.442695, %v219_v13  ;;  %v221_v18 = vmin.f32 %v2223_v63, 20.0  ;;  %v663_v32 = vmul.f32 %v1565_v10, %v2118_v16  ;;  %v3228_v13 = vld [vmem:[#allocation11_spill] sm:$0xff] }
  0x5f   : > { %v916_v3 = vsub.f32 2.0, %v852_v12  ;;  %v854_v34 = vmul.f32 %v790_v50, %v2105_v44  ;;  %1570 = vpow2.f32 %v296_v48  ;;  %v300_v41 = vmul.f32 1.442695, %v220_v39  ;;  %v1567_v44 = vpop.eup %1566 }
  0x60   : > { %v917_v17 = vsub.f32 2.0, %v853_v11  ;;  %1572 = vpow2.f32 %v298_v52  ;;  %v302_v28 = vmul.f32 1.442695, %v221_v18  ;;  %v727_v45 = vsub.f32 2.0, %v663_v32 }
  0x61   : > { %v980_v51 = vmul.f32 %v916_v3, %v788_v21  ;;  %v918_v38 = vsub.f32 2.0, %v854_v34  ;;  %1574 = vpow2.f32 %v300_v41  ;;  %v409_v33 = vadd.f32 2.0, %v1567_v44 }
  0x62   : > { %v981_v56 = vmul.f32 %v917_v17, %v789_v60  ;;  %v1569_v25 = vpop.eup %1568  ;;  %1576 = vpow2.f32 %v302_v28  ;;  %v791_v36 = vmul.f32 %v1565_v10, %v727_v45  ;;  %vm1175_vm11 = vcmp.gt.f32.partialorder %v3227_v15, 20.0  ;;  %v2295_v17 = vld [vmem:[%s1976_s24 + $0xb0] sm:$0xff] }
  0x63   : > { %v1044_v46 = vmul.f32 %v980_v51, %v2080_v26  ;;  %v982_v22 = vmul.f32 %v918_v38, %v790_v50  ;;  %v664_v26 = vmul.f32 %v1569_v25, %v2214_v4  ;;  %v2244_v29 = vmul.f32 %v1567_v44, %v409_v33  ;;  %v3229_v44 = vld [vmem:[#allocation9_spill] sm:$0xff] }
  0x64   : > { %v1045_v30 = vmul.f32 %v981_v56, %v2086_v31  ;;  %v222_v31 = vmin.f32 %v2236_v49, 20.0  ;;  %v223_v48 = vmin.f32 %v2267_v20, 20.0  ;;  %v224_v11 = vmin.f32 %v2270_v7, 20.0  ;;  %v2306_v56 = vld [vmem:[%s1976_s24 + $0xb8] sm:$0xff] }
  0x65   : > { %v1571_v54 = vpop.eup %1570  ;;  %v1108_v58 = vmul.f32 %v1044_v46, %v2013_v14  ;;  %v1046_v0 = vmul.f32 %v982_v22, %v2092_v35  ;;  %v855_v35 = vmul.f32 %v791_v36, %v2118_v16  ;;  %v728_v5 = vsub.f32 2.0, %v664_v26 }
  0x66   : > { %v1109_v62 = vmul.f32 %v1045_v30, %v2019_v23  ;;  %v410_v59 = vadd.f32 2.0, %v1571_v54  ;;  %v1573_v42 = vpop.eup %1572  ;;  %v2258_v9 = vadd.f32 2.0, %v2244_v29  ;;  %v304_v8 = vmul.f32 1.442695, %v222_v31 }
  0x67   : > { %v1236_v53 = vsel %vm1172_vm8, %v2013_v14, %v1108_v58  ;;  %v1110_v1 = vmul.f32 %v1046_v0, %v2022_v24  ;;  %v1575_v57 = vpop.eup %1574  ;;  %v919_v6 = vsub.f32 2.0, %v855_v35  ;;  %v792_v19 = vmul.f32 %v1569_v25, %v728_v5 }
  0x68   : > { %1300 = vst [vmem:[%s2160_s17 + $0x40] sm:$0xff] %v1236_v53  ;;  %v1237_v2 = vsel %vm1173_vm9, %v2019_v23, %v1109_v62  ;;  %v2260_v14 = vmul.f32 %v1571_v54, %v410_v59  ;;  %v411_v47 = vadd.f32 2.0, %v1573_v42  ;;  %v1577_v23 = vpop.eup %1576  ;;  %1578 = vrcp.f32 %v2258_v9 }
  0x69   : > { %1301 = vst [vmem:[%s2160_s17 + $0x48] sm:$0xff] %v1237_v2  ;;  %v1238_v16 = vsel %vm1174_vm10, %v2022_v24, %v1110_v1  ;;  %v412_v61 = vadd.f32 2.0, %v1575_v57  ;;  %v983_v60 = vmul.f32 %v919_v6, %v791_v36  ;;  %v856_v24 = vmul.f32 %v792_v19, %v2214_v4  ;;  %v2292_v4 = vld [vmem:[%s1976_s24 + $0xa8] sm:$0xff] }
  0x6a   : > { %1302 = vst [vmem:[%s2160_s17 + $0x50] sm:$0xff] %v1238_v16  ;;  %v2275_v21 = vadd.f32 2.0, %v2260_v14  ;;  %v2278_v12 = vmul.f32 %v1573_v42, %v411_v47  ;;  %v413_v50 = vadd.f32 2.0, %v1577_v23  ;;  %v306_v41 = vmul.f32 1.442695, %v223_v48  ;;  %v2326_v42 = vld [vmem:[%s1976_s24 + $0xc0] sm:$0xff] }
  0x6b   : > { %v2281_v43 = vmul.f32 %v1575_v57, %v412_v61  ;;  %v1047_v39 = vmul.f32 %v983_v60, %v3228_v13  ;;  %v920_v3 = vsub.f32 2.0, %v856_v24  ;;  %v308_v18 = vmul.f32 1.442695, %v224_v11 }
  0x6c   : > { %1580 = vrcp.f32 %v2275_v21  ;;  %v2287_v34 = vadd.f32 2.0, %v2278_v12  ;;  %v2289_v10 = vmul.f32 %v1577_v23, %v413_v50  ;;  %vm1176_vm12 = vcmp.gt.f32.partialorder %v3229_v44, 20.0 }
  0x6d   : > { %v2298_v52 = vadd.f32 2.0, %v2281_v43  ;;  %1582 = vpow2.f32 %v304_v8  ;;  %v1111_v51 = vmul.f32 %v1047_v39, %v3227_v15  ;;  %v984_v38 = vmul.f32 %v920_v3, %v792_v19 }
  0x6e   : > { %1584 = vrcp.f32 %v2287_v34  ;;  %v2303_v32 = vadd.f32 2.0, %v2289_v10  ;;  %v1579_v28 = vpop.eup %1578  ;;  %v225_v46 = vmin.f32 %v2292_v4, 20.0  ;;  %v226_v22 = vmin.f32 %v2295_v17, 20.0 }
  0x6f   : > { %1586 = vrcp.f32 %v2298_v52  ;;  %v1239_v45 = vsel %vm1175_vm11, %v3227_v15, %v1111_v51  ;;  %v1048_v25 = vmul.f32 %v984_v38, %v2122_v27  ;;  %v665_v30 = vmul.f32 %v1579_v28, %v2258_v9  ;;  %v3230_v15 = vld [vmem:[#allocation10_spill] sm:$0xff] }
  0x70   : > { %1588 = vrcp.f32 %v2303_v32  ;;  %1303 = vst [vmem:[%s2160_s17 + $0x58] sm:$0xff] %v1239_v45  ;;  %v310_v54 = vmul.f32 1.442695, %v225_v46  ;;  %v312_v58 = vmul.f32 1.442695, %v226_v22  ;;  %v227_v0 = vmin.f32 %v2306_v56, 20.0 }
  0x71   : > { %1590 = vpow2.f32 %v306_v41  ;;  %v1112_v36 = vmul.f32 %v1048_v25, %v3229_v44  ;;  %v729_v26 = vsub.f32 2.0, %v665_v30  ;;  %vm1177_vm13 = vcmp.gt.f32.partialorder %v3230_v15, 20.0 }
  0x72   : > { %v1581_v33 = vpop.eup %1580  ;;  %1592 = vpow2.f32 %v308_v18  ;;  %v314_v59 = vmul.f32 1.442695, %v227_v0  ;;  %vm1178_vm14 = vcmp.gt.f32.partialorder %v2100_v40, 20.0  ;;  %v228_v24 = vmin.f32 %v2326_v42, 20.0 }
  0x73   : > { %v666_v62 = vmul.f32 %v1581_v33, %v2275_v21  ;;  %v1583_v27 = vpop.eup %1582  ;;  %1594 = vpow2.f32 %v310_v54  ;;  %v1240_v53 = vsel %vm1176_vm12, %v3229_v44, %v1112_v36  ;;  %v793_v1 = vmul.f32 %v1579_v28, %v729_v26 }
  0x74   : > { %v1585_v31 = vpop.eup %1584  ;;  %v414_v5 = vadd.f32 2.0, %v1583_v27  ;;  %1304 = vst [vmem:[%s2160_s17 + $0x60] sm:$0xff] %v1240_v53  ;;  %1596 = vpow2.f32 %v312_v58  ;;  %vm1179_vm15 = vcmp.gt.f32.partialorder %v2203_v37, 20.0  ;;  %vm1180_vm0 = vcmp.gt.f32.partialorder %v2206_v55, 20.0 }
  0x75   : > { %v730_v35 = vsub.f32 2.0, %v666_v62  ;;  %v1587_v2 = vpop.eup %1586  ;;  %v667_v57 = vmul.f32 %v1585_v31, %v2287_v34  ;;  %v857_v6 = vmul.f32 %v793_v1, %v2258_v9  ;;  %1598 = vpow2.f32 %v314_v59 }
  0x76   : > { %v1589_v16 = vpop.eup %1588  ;;  %v668_v47 = vmul.f32 %v1587_v2, %v2298_v52  ;;  %v2333_v23 = vmul.f32 %v1583_v27, %v414_v5  ;;  %vm1181_vm1 = vcmp.gt.f32.partialorder %v2223_v63, 20.0  ;;  %vm1182_vm2 = vcmp.gt.f32.partialorder %v2236_v49, 20.0 }
  0x77   : > { %v794_v19 = vmul.f32 %v1581_v33, %v730_v35  ;;  %v1591_v61 = vpop.eup %1590  ;;  %v731_v8 = vsub.f32 2.0, %v667_v57  ;;  %v669_v60 = vmul.f32 %v1589_v16, %v2303_v32  ;;  %v921_v48 = vsub.f32 2.0, %v857_v6 }
  0x78   : > { %v1593_v50 = vpop.eup %1592  ;;  %v732_v13 = vsub.f32 2.0, %v668_v47  ;;  %v2340_v9 = vadd.f32 2.0, %v2333_v23  ;;  %v415_v18 = vadd.f32 2.0, %v1591_v61  ;;  %vm1183_vm3 = vcmp.gt.f32.partialorder %v2267_v20, 20.0 }
  0x79   : > { %v858_v11 = vmul.f32 %v794_v19, %v2275_v21  ;;  %v1595_v39 = vpop.eup %1594  ;;  %v795_v3 = vmul.f32 %v1585_v31, %v731_v8  ;;  %v733_v41 = vsub.f32 2.0, %v669_v60  ;;  %v416_v51 = vadd.f32 2.0, %v1593_v50 }
  0x7a   : > { %v985_v38 = vmul.f32 %v921_v48, %v793_v1  ;;  %v796_v44 = vmul.f32 %v1587_v2, %v732_v13  ;;  %1600 = vrcp.f32 %v2340_v9  ;;  %v1597_v46 = vpop.eup %1596  ;;  %v2346_v45 = vmul.f32 %v1591_v61, %v415_v18 }
  0x7b   : > { %v922_v28 = vsub.f32 2.0, %v858_v11  ;;  %v859_v22 = vmul.f32 %v795_v3, %v2287_v34  ;;  %v797_v21 = vmul.f32 %v1589_v16, %v733_v41  ;;  %v2348_v25 = vmul.f32 %v1593_v50, %v416_v51  ;;  %v1599_v0 = vpop.eup %1598 }
  0x7c   : > { %v1049_v30 = vmul.f32 %v985_v38, %v2244_v29  ;;  %v860_v54 = vmul.f32 %v796_v44, %v2298_v52  ;;  %v417_v58 = vadd.f32 2.0, %v1595_v39  ;;  %v2354_v34 = vadd.f32 2.0, %v2346_v45  ;;  %v2406_v38 = vld [vmem:[%s1976_s24 + $0xd0] sm:$0xff] }
  0x7d   : > { %v986_v33 = vmul.f32 %v922_v28, %v794_v19  ;;  %v923_v36 = vsub.f32 2.0, %v859_v22  ;;  %v861_v26 = vmul.f32 %v797_v21, %v2303_v32  ;;  %v2357_v62 = vadd.f32 2.0, %v2348_v25  ;;  %v2376_v19 = vld [vmem:[%s1976_s24 + $0xc8] sm:$0xff] }
  0x7e   : > { %v1113_v27 = vmul.f32 %v1049_v30, %v3230_v15  ;;  %v924_v29 = vsub.f32 2.0, %v860_v54  ;;  %v2361_v31 = vmul.f32 %v1595_v39, %v417_v58  ;;  %1602 = vrcp.f32 %v2354_v34 }
  0x7f   : > { %v1050_v59 = vmul.f32 %v986_v33, %v2260_v14  ;;  %v987_v52 = vmul.f32 %v923_v36, %v795_v3  ;;  %v925_v53 = vsub.f32 2.0, %v861_v26  ;;  %v316_v32 = vmul.f32 1.442695, %v228_v24 }
  0x80   : > { %v1601_v1 = vpop.eup %1600  ;;  %v1241_v35 = vsel %vm1177_vm13, %v3230_v15, %v1113_v27  ;;  %v988_v2 = vmul.f32 %v924_v29, %v796_v44  ;;  %1604 = vrcp.f32 %v2357_v62  ;;  %v2373_v6 = vadd.f32 2.0, %v2361_v31 }
  0x81   : > { %v1114_v5 = vmul.f32 %v1050_v59, %v2100_v40  ;;  %1305 = vst [vmem:[%s2160_s17 + $0x68] sm:$0xff] %v1241_v35  ;;  %v1051_v14 = vmul.f32 %v987_v52, %v2278_v12  ;;  %v989_v57 = vmul.f32 %v925_v53, %v797_v21  ;;  %v670_v16 = vmul.f32 %v1601_v1, %v2340_v9 }
  0x82   : > { %v1052_v47 = vmul.f32 %v988_v2, %v2281_v43  ;;  %v418_v61 = vadd.f32 2.0, %v1597_v46  ;;  %1606 = vrcp.f32 %v2373_v6  ;;  %v229_v43 = vmin.f32 %v2376_v19, 20.0 }
  0x83   : > { %v1242_v15 = vsel %vm1178_vm14, %v2100_v40, %v1114_v5  ;;  %v1115_v12 = vmul.f32 %v1051_v14, %v2203_v37  ;;  %v1053_v8 = vmul.f32 %v989_v57, %v2289_v10  ;;  %v734_v60 = vsub.f32 2.0, %v670_v16 }
  0x84   : > { %1306 = vst [vmem:[%s2160_s17 + $0x70] sm:$0xff] %v1242_v15  ;;  %v1116_v24 = vmul.f32 %v1052_v47, %v2206_v55  ;;  %v2388_v50 = vmul.f32 %v1597_v46, %v418_v61  ;;  %v419_v40 = vadd.f32 2.0, %v1599_v0  ;;  %v1603_v48 = vpop.eup %1602  ;;  %1608 = vpow2.f32 %v316_v32 }
  0x85   : > { %v1243_v11 = vsel %vm1179_vm15, %v2203_v37, %v1115_v12  ;;  %v1117_v10 = vmul.f32 %v1053_v8, %v2223_v63  ;;  %v798_v13 = vmul.f32 %v1601_v1, %v734_v60  ;;  %v671_v41 = vmul.f32 %v1603_v48, %v2354_v34  ;;  %v2409_v37 = vld [vmem:[%s1976_s24 + $0xd8] sm:$0xff]  ;;  %v2430_v1 = vld [vmem:[%s1976_s24 + $0xe0] sm:$0xff] }
  0x86   : > { %v1605_v39 = vpop.eup %1604  ;;  %1307 = vst [vmem:[%s2160_s17 + $0x78] sm:$0xff] %v1243_v11  ;;  %v1244_v3 = vsel %vm1180_vm0, %v2206_v55, %v1116_v24  ;;  %v2401_v18 = vadd.f32 2.0, %v2388_v50  ;;  %v2403_v51 = vmul.f32 %v1599_v0, %v419_v40  ;;  %v318_v21 = vmul.f32 1.442695, %v229_v43 }
  0x87   : > { %1308 = vst [vmem:[%s2160_s17 + $0x80] sm:$0xff] %v1244_v3  ;;  %v1245_v28 = vsel %vm1181_vm1, %v2223_v63, %v1117_v10  ;;  %v862_v44 = vmul.f32 %v798_v13, %v2340_v9  ;;  %v672_v55 = vmul.f32 %v1605_v39, %v2357_v62  ;;  %v735_v46 = vsub.f32 2.0, %v671_v41 }
  0x88   : > { %1309 = vst [vmem:[%s2160_s17 + $0x88] sm:$0xff] %v1245_v28  ;;  %1610 = vrcp.f32 %v2401_v18  ;;  %v2420_v22 = vadd.f32 2.0, %v2403_v51  ;;  %v1607_v30 = vpop.eup %1606  ;;  %v230_v58 = vmin.f32 %v2406_v38, 20.0  ;;  %v231_v63 = vmin.f32 %v2409_v37, 20.0 }
  0x89   : > { %v926_v33 = vsub.f32 2.0, %v862_v44  ;;  %v736_v54 = vsub.f32 2.0, %v672_v55  ;;  %v799_v9 = vmul.f32 %v1603_v48, %v735_v46  ;;  %v673_v0 = vmul.f32 %v1607_v30, %v2373_v6 }
  0x8a   : > { %1612 = vrcp.f32 %v2420_v22  ;;  %v1609_v36 = vpop.eup %1608  ;;  %v320_v59 = vmul.f32 1.442695, %v230_v58  ;;  %v322_v32 = vmul.f32 1.442695, %v231_v63  ;;  %vm1184_vm4 = vcmp.gt.f32.partialorder %v2270_v7, 20.0 }
  0x8b   : > { %v990_v26 = vmul.f32 %v926_v33, %v798_v13  ;;  %v800_v27 = vmul.f32 %v1605_v39, %v736_v54  ;;  %1614 = vpow2.f32 %v318_v21  ;;  %v863_v29 = vmul.f32 %v799_v9, %v2354_v34  ;;  %v2460_v54 = vld [vmem:[%s1976_s24 + $0xe8] sm:$0xff] }
  0x8c   : > { %v737_v52 = vsub.f32 2.0, %v673_v0  ;;  %v420_v53 = vadd.f32 2.0, %v1609_v36  ;;  %1616 = vpow2.f32 %v320_v59  ;;  %v232_v61 = vmin.f32 %v2430_v1, 20.0 }
  0x8d   : > { %v1054_v35 = vmul.f32 %v990_v26, %v2333_v23  ;;  %v864_v5 = vmul.f32 %v800_v27, %v2357_v62  ;;  %v927_v14 = vsub.f32 2.0, %v863_v29  ;;  %1618 = vpow2.f32 %v322_v32 }
  0x8e   : > { %v1611_v2 = vpop.eup %1610  ;;  %v801_v57 = vmul.f32 %v1607_v30, %v737_v52  ;;  %v2435_v16 = vmul.f32 %v1609_v36, %v420_v53  ;;  %vm1185_vm5 = vcmp.gt.f32.partialorder %v2292_v4, 20.0  ;;  %v324_v28 = vmul.f32 1.442695, %v232_v61 }
  0x8f   : > { %v1118_v34 = vmul.f32 %v1054_v35, %v2236_v49  ;;  %v928_v15 = vsub.f32 2.0, %v864_v5  ;;  %v674_v47 = vmul.f32 %v1611_v2, %v2401_v18  ;;  %v991_v12 = vmul.f32 %v927_v14, %v799_v9  ;;  %v2493_v35 = vld [vmem:[%s1976_s24 + $0xf8] sm:$0xff]  ;;  %v2496_v5 = vld [vmem:[%s1976_s24 + $0x100] sm:$0xff] }
  0x90   : > { %v1613_v23 = vpop.eup %1612  ;;  %v865_v62 = vmul.f32 %v801_v57, %v2373_v6  ;;  %v2443_v8 = vadd.f32 2.0, %v2435_v16  ;;  %vm1186_vm6 = vcmp.gt.f32.partialorder %v2295_v17, 20.0  ;;  %vm1187_vm7 = vcmp.gt.f32.partialorder %v2306_v56, 20.0 }
  0x91   : > { %v1615_v60 = vpop.eup %1614  ;;  %v1246_v24 = vsel %vm1182_vm2, %v2236_v49, %v1118_v34  ;;  %v992_v40 = vmul.f32 %v928_v15, %v800_v27  ;;  %v738_v43 = vsub.f32 2.0, %v674_v47  ;;  %v675_v48 = vmul.f32 %v1613_v23, %v2420_v22 }
  0x92   : > { %1310 = vst [vmem:[%s2160_s17 + $0x90] sm:$0xff] %v1246_v24  ;;  %v1055_v11 = vmul.f32 %v991_v12, %v2346_v45  ;;  %v929_v10 = vsub.f32 2.0, %v865_v62  ;;  %1620 = vrcp.f32 %v2443_v8  ;;  %v421_v6 = vadd.f32 2.0, %v1615_v60  ;;  %v1617_v13 = vpop.eup %1616  ;;  %v2511_v24 = vld [vmem:[%s1976_s24 + $0x108] sm:$0xff] }
  0x93   : > { %v1056_v39 = vmul.f32 %v992_v40, %v2348_v25  ;;  %v802_v3 = vmul.f32 %v1611_v2, %v738_v43  ;;  %v739_v41 = vsub.f32 2.0, %v675_v48  ;;  %v1619_v49 = vpop.eup %1618  ;;  %v422_v45 = vadd.f32 2.0, %v1617_v13 }
  0x94   : > { %v1119_v44 = vmul.f32 %v1055_v11, %v2267_v20  ;;  %v993_v55 = vmul.f32 %v929_v10, %v801_v57  ;;  %v2455_v46 = vmul.f32 %v1615_v60, %v421_v6  ;;  %v423_v33 = vadd.f32 2.0, %v1619_v49 }
  0x95   : > { %v1120_v21 = vmul.f32 %v1056_v39, %v2270_v7  ;;  %v866_v30 = vmul.f32 %v802_v3, %v2401_v18  ;;  %v803_v25 = vmul.f32 %v1613_v23, %v739_v41  ;;  %v2469_v0 = vmul.f32 %v1617_v13, %v422_v45 }
  0x96   : > { %v1247_v58 = vsel %vm1183_vm3, %v2267_v20, %v1119_v44  ;;  %v1057_v63 = vmul.f32 %v993_v55, %v2361_v31  ;;  %v2467_v9 = vadd.f32 2.0, %v2455_v46  ;;  %v2476_v27 = vmul.f32 %v1619_v49, %v423_v33  ;;  %v2479_v20 = vld [vmem:[%s1976_s24 + $0xf0] sm:$0xff] }
  0x97   : > { %1311 = vst [vmem:[%s2160_s17 + $0x98] sm:$0xff] %v1247_v58  ;;  %v1248_v18 = vsel %vm1184_vm4, %v2270_v7, %v1120_v21  ;;  %v930_v36 = vsub.f32 2.0, %v866_v30  ;;  %v867_v26 = vmul.f32 %v803_v25, %v2420_v22  ;;  %v2485_v29 = vadd.f32 2.0, %v2469_v0  ;;  %v2528_v33 = vld [vmem:[%s1976_s24 + $0x110] sm:$0xff] }
  0x98   : > { %v1621_v31 = vpop.eup %1620  ;;  %1312 = vst [vmem:[%s2160_s17 + $0xa0] sm:$0xff] %v1248_v18  ;;  %v1121_v59 = vmul.f32 %v1057_v63, %v2292_v4  ;;  %1622 = vrcp.f32 %v2467_v9  ;;  %v233_v7 = vmin.f32 %v2460_v54, 20.0  ;;  %v2490_v32 = vadd.f32 2.0, %v2476_v27 }
  0x99   : > { %v994_v52 = vmul.f32 %v930_v36, %v802_v3  ;;  %v931_v53 = vsub.f32 2.0, %v867_v26  ;;  %v676_v22 = vmul.f32 %v1621_v31, %v2443_v8  ;;  %1624 = vrcp.f32 %v2485_v29 }
  0x9a   : > { %v1249_v2 = vsel %vm1185_vm5, %v2292_v4, %v1121_v59  ;;  %v326_v14 = vmul.f32 1.442695, %v233_v7  ;;  %v234_v57 = vmin.f32 %v2479_v20, 20.0  ;;  %1626 = vrcp.f32 %v2490_v32 }
  0x9b   : > { %1313 = vst [vmem:[%s2160_s17 + $0xa8] sm:$0xff] %v1249_v2  ;;  %v1058_v34 = vmul.f32 %v994_v52, %v2388_v50  ;;  %v995_v15 = vmul.f32 %v931_v53, %v803_v25  ;;  %v740_v47 = vsub.f32 2.0, %v676_v22  ;;  %1628 = vpow2.f32 %v324_v28 }
  0x9c   : > { %v328_v61 = vmul.f32 1.442695, %v234_v57  ;;  %v235_v23 = vmin.f32 %v2493_v35, 20.0  ;;  %v236_v12 = vmin.f32 %v2496_v5, 20.0  ;;  %1630 = vpow2.f32 %v326_v14 }
  0x9d   : > { %v1122_v4 = vmul.f32 %v1058_v34, %v2295_v17  ;;  %v1059_v62 = vmul.f32 %v995_v15, %v2403_v51  ;;  %v804_v60 = vmul.f32 %v1621_v31, %v740_v47  ;;  %v237_v13 = vmin.f32 %v2511_v24, 20.0 }
  0x9e   : > { %v1623_v50 = vpop.eup %1622  ;;  %1632 = vpow2.f32 %v328_v61  ;;  %v330_v40 = vmul.f32 1.442695, %v235_v23  ;;  %v332_v43 = vmul.f32 1.442695, %v236_v12  ;;  %vm1188_vm8 = vcmp.gt.f32.partialorder %v2326_v42, 20.0 }
  0x9f   : > { %v1250_v48 = vsel %vm1186_vm6, %v2295_v17, %v1122_v4  ;;  %v1123_v11 = vmul.f32 %v1059_v62, %v2306_v56  ;;  %v868_v10 = vmul.f32 %v804_v60, %v2443_v8  ;;  %v677_v51 = vmul.f32 %v1623_v50, %v2467_v9  ;;  %v1625_v6 = vpop.eup %1624 }
  0xa0   : > { %1314 = vst [vmem:[%s2160_s17 + $0xb0] sm:$0xff] %v1250_v48  ;;  %1634 = vpow2.f32 %v330_v40  ;;  %v1627_v39 = vpop.eup %1626  ;;  %v678_v49 = vmul.f32 %v1625_v6, %v2485_v29  ;;  %v334_v44 = vmul.f32 1.442695, %v237_v13  ;;  %vm1189_vm9 = vcmp.gt.f32.partialorder %v2376_v19, 20.0  ;;  %v2563_v48 = vld [vmem:[%s1976_s24 + $0x118] sm:$0xff] }
  0xa1   : > { %v1251_v3 = vsel %vm1187_vm7, %v2306_v56, %v1123_v11  ;;  %v932_v41 = vsub.f32 2.0, %v868_v10  ;;  %v741_v28 = vsub.f32 2.0, %v677_v51  ;;  %v1629_v17 = vpop.eup %1628  ;;  %v679_v8 = vmul.f32 %v1627_v39, %v2490_v32 }
  0xa2   : > { %1315 = vst [vmem:[%s2160_s17 + $0xb8] sm:$0xff] %v1251_v3  ;;  %1636 = vpow2.f32 %v332_v43  ;;  %v1631_v55 = vpop.eup %1630  ;;  %v742_v30 = vsub.f32 2.0, %v678_v49  ;;  %v424_v25 = vadd.f32 2.0, %v1629_v17  ;;  %vm1190_vm10 = vcmp.gt.f32.partialorder %v2406_v38, 20.0 }
  0xa3   : > { %v996_v45 = vmul.f32 %v932_v41, %v804_v60  ;;  %v805_v21 = vmul.f32 %v1623_v50, %v741_v28  ;;  %v743_v58 = vsub.f32 2.0, %v679_v8  ;;  %v425_v63 = vadd.f32 2.0, %v1631_v55  ;;  %v2580_v28 = vld [vmem:[%s1976_s24 + $0x120] sm:$0xff] }
  0xa4   : > { %v1633_v56 = vpop.eup %1632  ;;  %1638 = vpow2.f32 %v334_v44  ;;  %v806_v26 = vmul.f32 %v1625_v6, %v742_v30  ;;  %v2533_v31 = vmul.f32 %v1629_v17, %v424_v25  ;;  %v238_v22 = vmin.f32 %v2528_v33, 20.0  ;;  %v2593_v44 = vld [vmem:[%s1976_s24 + $0x128] sm:$0xff] }
  0xa5   : > { %v1060_v18 = vmul.f32 %v996_v45, %v2435_v16  ;;  %v869_v36 = vmul.f32 %v805_v21, %v2467_v9  ;;  %v807_v7 = vmul.f32 %v1627_v39, %v743_v58  ;;  %v2536_v52 = vmul.f32 %v1631_v55, %v425_v63  ;;  %v2605_v58 = vld [vmem:[%s1976_s24 + $0x130] sm:$0xff] }
  0xa6   : > { %v1635_v59 = vpop.eup %1634  ;;  %v426_v53 = vadd.f32 2.0, %v1633_v56  ;;  %v870_v16 = vmul.f32 %v806_v26, %v2485_v29  ;;  %v2542_v9 = vadd.f32 2.0, %v2533_v31  ;;  %vm1191_vm11 = vcmp.gt.f32.partialorder %v2409_v37, 20.0 }
  0xa7   : > { %v1124_v2 = vmul.f32 %v1060_v18, %v2326_v42  ;;  %v933_v14 = vsub.f32 2.0, %v869_v36  ;;  %v871_v34 = vmul.f32 %v807_v7, %v2490_v32  ;;  %v2546_v15 = vadd.f32 2.0, %v2536_v52 }
  0xa8   : > { %v1637_v57 = vpop.eup %1636  ;;  %v2548_v47 = vmul.f32 %v1633_v56, %v426_v53  ;;  %v427_v61 = vadd.f32 2.0, %v1635_v59  ;;  %v934_v4 = vsub.f32 2.0, %v870_v16  ;;  %1640 = vrcp.f32 %v2542_v9 }
  0xa9   : > { %v1252_v23 = vsel %vm1188_vm8, %v2326_v42, %v1124_v2  ;;  %v997_v12 = vmul.f32 %v933_v14, %v805_v21  ;;  %v935_v62 = vsub.f32 2.0, %v871_v34  ;;  %1642 = vrcp.f32 %v2546_v15 }
  0xaa   : > { %v1639_v29 = vpop.eup %1638  ;;  %1316 = vst [vmem:[%s2160_s17 + $0xc0] sm:$0xff] %v1252_v23  ;;  %v2557_v32 = vadd.f32 2.0, %v2548_v47  ;;  %v2559_v60 = vmul.f32 %v1635_v59, %v427_v61  ;;  %v998_v40 = vmul.f32 %v934_v4, %v806_v26  ;;  %v428_v43 = vadd.f32 2.0, %v1637_v57 }
  0xab   : > { %v1061_v50 = vmul.f32 %v997_v12, %v2455_v46  ;;  %v429_v42 = vadd.f32 2.0, %v1639_v29  ;;  %v999_v11 = vmul.f32 %v935_v62, %v807_v7  ;;  %v336_v3 = vmul.f32 1.442695, %v238_v22 }
  0xac   : > { %1644 = vrcp.f32 %v2557_v32  ;;  %v2568_v10 = vadd.f32 2.0, %v2559_v60  ;;  %v1062_v46 = vmul.f32 %v998_v40, %v2469_v0  ;;  %v2572_v6 = vmul.f32 %v1637_v57, %v428_v43 }
  0xad   : > { %v1125_v51 = vmul.f32 %v1061_v50, %v2376_v19  ;;  %v2574_v13 = vmul.f32 %v1639_v29, %v429_v42  ;;  %v1063_v39 = vmul.f32 %v999_v11, %v2476_v27  ;;  %v239_v41 = vmin.f32 %v2563_v48, 20.0 }
  0xae   : > { %1646 = vrcp.f32 %v2568_v10  ;;  %v1641_v49 = vpop.eup %1640  ;;  %v1126_v0 = vmul.f32 %v1062_v46, %v2406_v38  ;;  %v2587_v8 = vadd.f32 2.0, %v2572_v6  ;;  %v240_v56 = vmin.f32 %v2580_v28, 20.0 }
  0xaf   : > { %v1253_v17 = vsel %vm1189_vm9, %v2376_v19, %v1125_v51  ;;  %v2590_v27 = vadd.f32 2.0, %v2574_v13  ;;  %v1643_v55 = vpop.eup %1642  ;;  %v1127_v45 = vmul.f32 %v1063_v39, %v2409_v37  ;;  %v680_v21 = vmul.f32 %v1641_v49, %v2542_v9 }
  0xb0   : > { %1317 = vst [vmem:[%s2160_s17 + $0xc8] sm:$0xff] %v1253_v17  ;;  %1648 = vpow2.f32 %v336_v3  ;;  %v338_v19 = vmul.f32 1.442695, %v239_v41  ;;  %v1254_v30 = vsel %vm1190_vm10, %v2406_v38, %v1126_v0  ;;  %v681_v25 = vmul.f32 %v1643_v55, %v2546_v15  ;;  %v2614_v38 = vld [vmem:[%s1976_s24 + $0x138] sm:$0xff] }
  0xb1   : > { %1650 = vrcp.f32 %v2587_v8  ;;  %1318 = vst [vmem:[%s2160_s17 + $0xd0] sm:$0xff] %v1254_v30  ;;  %v1255_v18 = vsel %vm1191_vm11, %v2409_v37, %v1127_v45  ;;  %v744_v36 = vsub.f32 2.0, %v680_v21  ;;  %v241_v26 = vmin.f32 %v2593_v44, 20.0 }
  0xb2   : > { %v1645_v63 = vpop.eup %1644  ;;  %1652 = vrcp.f32 %v2590_v27  ;;  %1319 = vst [vmem:[%s2160_s17 + $0xd8] sm:$0xff] %v1255_v18  ;;  %v745_v59 = vsub.f32 2.0, %v681_v25  ;;  %v340_v2 = vmul.f32 1.442695, %v240_v56  ;;  %v242_v16 = vmin.f32 %v2605_v58, 20.0 }
  0xb3   : > { %v682_v7 = vmul.f32 %v1645_v63, %v2557_v32  ;;  %1654 = vpow2.f32 %v338_v19  ;;  %v808_v22 = vmul.f32 %v1641_v49, %v744_v36  ;;  %v342_v14 = vmul.f32 1.442695, %v241_v26 }
  0xb4   : > { %v1647_v53 = vpop.eup %1646  ;;  %vm1192_vm12 = vcmp.gt.f32.partialorder %v2430_v1, 20.0  ;;  %v809_v37 = vmul.f32 %v1643_v55, %v745_v59  ;;  %v243_v61 = vmin.f32 %v2614_v38, 20.0  ;;  %vm1193_vm13 = vcmp.gt.f32.partialorder %v2460_v54, 20.0 }
  0xb5   : > { %v746_v57 = vsub.f32 2.0, %v682_v7  ;;  %v683_v34 = vmul.f32 %v1647_v53, %v2568_v10  ;;  %v872_v12 = vmul.f32 %v808_v22, %v2542_v9  ;;  %1656 = vpow2.f32 %v340_v2 }
  0xb6   : > { %v1649_v23 = vpop.eup %1648  ;;  %v2624_v4 = vmul.f32 1.442695, %v242_v16  ;;  %v873_v62 = vmul.f32 %v809_v37, %v2546_v15  ;;  %vm1194_vm14 = vcmp.gt.f32.partialorder %v2479_v20, 20.0  ;;  %1658 = vpow2.f32 %v342_v14 }
  0xb7   : > { %v1651_v29 = vpop.eup %1650  ;;  %v810_v50 = vmul.f32 %v1645_v63, %v746_v57  ;;  %v747_v40 = vsub.f32 2.0, %v683_v34  ;;  %v430_v43 = vadd.f32 2.0, %v1649_v23  ;;  %v936_v11 = vsub.f32 2.0, %v872_v12 }
  0xb8   : > { %v1653_v42 = vpop.eup %1652  ;;  %v684_v51 = vmul.f32 %v1651_v29, %v2587_v8  ;;  %v346_v46 = vmul.f32 1.442695, %v243_v61  ;;  %v937_v39 = vsub.f32 2.0, %v873_v62  ;;  %vm1195_vm15 = vcmp.gt.f32.partialorder %v2493_v35, 20.0 }
  0xb9   : > { %v1655_v9 = vpop.eup %1654  ;;  %v874_v3 = vmul.f32 %v810_v50, %v2557_v32  ;;  %v811_v41 = vmul.f32 %v1647_v53, %v747_v40  ;;  %v685_v49 = vmul.f32 %v1653_v42, %v2590_v27  ;;  %v1000_v17 = vmul.f32 %v936_v11, %v808_v22 }
  0xba   : > { %v748_v15 = vsub.f32 2.0, %v684_v51  ;;  %v2632_v0 = vmul.f32 %v1649_v23, %v430_v43  ;;  %v431_v55 = vadd.f32 2.0, %v1655_v9  ;;  %v1001_v45 = vmul.f32 %v937_v39, %v809_v37 }
  0xbb   : > { %v938_v21 = vsub.f32 2.0, %v874_v3  ;;  %v875_v19 = vmul.f32 %v811_v41, %v2568_v10  ;;  %v749_v30 = vsub.f32 2.0, %v685_v49  ;;  %v1657_v25 = vpop.eup %1656  ;;  %v1064_v56 = vmul.f32 %v1000_v17, %v2533_v31  ;;  %v2702_v49 = vld [vmem:[%s1976_s24 + $0x158] sm:$0xff] }
  0xbc   : > { %v812_v63 = vmul.f32 %v1651_v29, %v748_v15  ;;  %v2637_v32 = vadd.f32 2.0, %v2632_v0  ;;  %v2639_v18 = vmul.f32 %v1655_v9, %v431_v55  ;;  %v1065_v36 = vmul.f32 %v1001_v45, %v2536_v52  ;;  %v1659_v53 = vpop.eup %1658  ;;  %v2687_v9 = vld [vmem:[%s1976_s24 + $0x148] sm:$0xff] }
  0xbd   : > { %v1002_v26 = vmul.f32 %v938_v21, %v810_v50  ;;  %v939_v59 = vsub.f32 2.0, %v875_v19  ;;  %v813_v7 = vmul.f32 %v1653_v42, %v749_v30  ;;  %v1128_v22 = vmul.f32 %v1064_v56, %v2430_v1 }
  0xbe   : > { %v876_v10 = vmul.f32 %v812_v63, %v2587_v8  ;;  %1660 = vrcp.f32 %v2637_v32  ;;  %v2646_v31 = vadd.f32 2.0, %v2639_v18  ;;  %v1129_v2 = vmul.f32 %v1065_v36, %v2460_v54 }
  0xbf   : > { %v1066_v14 = vmul.f32 %v1002_v26, %v2548_v47  ;;  %v1003_v52 = vmul.f32 %v939_v59, %v811_v41  ;;  %v877_v16 = vmul.f32 %v813_v7, %v2590_v27  ;;  %v1256_v37 = vsel %vm1192_vm12, %v2430_v1, %v1128_v22 }
  0xc0   : > { %v940_v57 = vsub.f32 2.0, %v876_v10  ;;  %1662 = vrcp.f32 %v2646_v31  ;;  %v432_v8 = vadd.f32 2.0, %v1657_v25  ;;  %1320 = vst [vmem:[%s2160_s17 + $0xe0] sm:$0xff] %v1256_v37  ;;  %v1257_v34 = vsel %vm1193_vm13, %v2460_v54, %v1129_v2 }
  0xc1   : > { %v1130_v47 = vmul.f32 %v1066_v14, %v2479_v20  ;;  %v1067_v61 = vmul.f32 %v1003_v52, %v2559_v60  ;;  %v941_v27 = vsub.f32 2.0, %v877_v16  ;;  %1321 = vst [vmem:[%s2160_s17 + $0xe8] sm:$0xff] %v1257_v34  ;;  %vm1196_vm0 = vcmp.gt.f32.partialorder %v2496_v5, 20.0  ;;  %v2671_v60 = vld [vmem:[%s1976_s24 + $0x140] sm:$0xff] }
  0xc2   : > { %v1004_v23 = vmul.f32 %v940_v57, %v812_v63  ;;  %v2663_v1 = vmul.f32 %v1657_v25, %v432_v8  ;;  %v433_v12 = vadd.f32 2.0, %v1659_v53  ;;  %vm1197_vm1 = vcmp.gt.f32.partialorder %v2511_v24, 20.0 }
  0xc3   : > { %v1258_v29 = vsel %vm1194_vm14, %v2479_v20, %v1130_v47  ;;  %v1131_v62 = vmul.f32 %v1067_v61, %v2493_v35  ;;  %v1005_v54 = vmul.f32 %v941_v27, %v813_v7  ;;  %1664 = vpow2.f32 %v2624_v4 }
  0xc4   : > { %v1661_v50 = vpop.eup %1660  ;;  %1322 = vst [vmem:[%s2160_s17 + $0xf0] sm:$0xff] %v1258_v29  ;;  %v1068_v40 = vmul.f32 %v1004_v23, %v2572_v6  ;;  %v2676_v43 = vadd.f32 2.0, %v2663_v1  ;;  %v2678_v42 = vmul.f32 %v1659_v53, %v433_v12  ;;  %1666 = vpow2.f32 %v346_v46 }
  0xc5   : > { %v1259_v20 = vsel %vm1195_vm15, %v2493_v35, %v1131_v62  ;;  %v1069_v11 = vmul.f32 %v1005_v54, %v2574_v13  ;;  %v686_v51 = vmul.f32 %v1661_v50, %v2637_v32  ;;  %v244_v3 = vmin.f32 %v2671_v60, 20.0  ;;  %v2697_v35 = vld [vmem:[%s1976_s24 + $0x150] sm:$0xff] }
  0xc6   : > { %v1663_v6 = vpop.eup %1662  ;;  %1323 = vst [vmem:[%s2160_s17 + $0xf8] sm:$0xff] %v1259_v20  ;;  %v1132_v39 = vmul.f32 %v1068_v40, %v2496_v5  ;;  %1668 = vrcp.f32 %v2676_v43  ;;  %v2693_v4 = vadd.f32 2.0, %v2678_v42  ;;  %v245_v55 = vmin.f32 %v2687_v9, 20.0 }
  0xc7   : > { %v1133_v13 = vmul.f32 %v1069_v11, %v2511_v24  ;;  %v750_v46 = vsub.f32 2.0, %v686_v51  ;;  %v687_v41 = vmul.f32 %v1663_v6, %v2646_v31  ;;  %v348_v15 = vmul.f32 1.442695, %v244_v3 }
  0xc8   : > { %v1260_v17 = vsel %vm1196_vm0, %v2496_v5, %v1132_v39  ;;  %1670 = vrcp.f32 %v2693_v4  ;;  %v246_v30 = vmin.f32 %v2697_v35, 20.0  ;;  %v350_v56 = vmul.f32 1.442695, %v245_v55 }
  0xc9   : > { %1324 = vst [vmem:[%s2160_s17 + $0x100] sm:$0xff] %v1260_v17  ;;  %v1261_v45 = vsel %vm1197_vm1, %v2511_v24, %v1133_v13  ;;  %v814_v21 = vmul.f32 %v1661_v50, %v750_v46  ;;  %v751_v19 = vsub.f32 2.0, %v687_v41  ;;  %v1665_v25 = vpop.eup %1664  ;;  %1672 = vpow2.f32 %v348_v15  ;;  %v2744_v46 = vld [vmem:[%s1976_s24 + $0x160] sm:$0xff] }
  0xca   : > { %1325 = vst [vmem:[%s2160_s17 + $0x108] sm:$0xff] %v1261_v45  ;;  %v247_v5 = vmin.f32 %v2702_v49, 20.0  ;;  %v1667_v63 = vpop.eup %1666  ;;  %v434_v59 = vadd.f32 2.0, %v1665_v25  ;;  %v352_v7 = vmul.f32 1.442695, %v246_v30  ;;  %1674 = vpow2.f32 %v350_v56 }
  0xcb   : > { %v878_v36 = vmul.f32 %v814_v21, %v2637_v32  ;;  %v815_v26 = vmul.f32 %v1663_v6, %v751_v19  ;;  %v435_v22 = vadd.f32 2.0, %v1667_v63  ;;  %vm1198_vm2 = vcmp.gt.f32.partialorder %v2528_v33, 20.0  ;;  %v2755_v19 = vld [vmem:[%s1976_s24 + $0x168] sm:$0xff] }
  0xcc   : > { %v1669_v53 = vpop.eup %1668  ;;  %v354_v24 = vmul.f32 1.442695, %v247_v5  ;;  %v2719_v52 = vmul.f32 %v1665_v25, %v434_v59  ;;  %1676 = vpow2.f32 %v352_v7  ;;  %vm1199_vm3 = vcmp.gt.f32.partialorder %v2563_v48, 20.0 }
  0xcd   : > { %v942_v10 = vsub.f32 2.0, %v878_v36  ;;  %v879_v2 = vmul.f32 %v815_v26, %v2646_v31  ;;  %v688_v14 = vmul.f32 %v1669_v53, %v2676_v43  ;;  %v2721_v37 = vmul.f32 %v1667_v63, %v435_v22 }
  0xce   : > { %v1671_v16 = vpop.eup %1670  ;;  %v2725_v61 = vadd.f32 2.0, %v2719_v52  ;;  %1678 = vpow2.f32 %v354_v24  ;;  %vm1200_vm4 = vcmp.gt.f32.partialorder %v2580_v28, 20.0  ;;  %v248_v56 = vmin.f32 %v2744_v46, 20.0 }
  0xcf   : > { %v1006_v57 = vmul.f32 %v942_v10, %v814_v21  ;;  %v943_v32 = vsub.f32 2.0, %v879_v2  ;;  %v752_v8 = vsub.f32 2.0, %v688_v14  ;;  %v689_v34 = vmul.f32 %v1671_v16, %v2693_v4  ;;  %v1673_v47 = vpop.eup %1672  ;;  %v2782_v2 = vld [vmem:[%s1976_s24 + $0x178] sm:$0xff]  ;;  %v2785_v14 = vld [vmem:[%s1976_s24 + $0x180] sm:$0xff] }
  0xd0   : > { %v2728_v27 = vadd.f32 2.0, %v2721_v37  ;;  %v1675_v62 = vpop.eup %1674  ;;  %1680 = vrcp.f32 %v2725_v61  ;;  %v436_v54 = vadd.f32 2.0, %v1673_v47  ;;  %vm1201_vm5 = vcmp.gt.f32.partialorder %v2593_v44, 20.0 }
  0xd1   : > { %v1070_v31 = vmul.f32 %v1006_v57, %v2632_v0  ;;  %v1007_v23 = vmul.f32 %v943_v32, %v815_v26  ;;  %v816_v12 = vmul.f32 %v1669_v53, %v752_v8  ;;  %v753_v29 = vsub.f32 2.0, %v689_v34  ;;  %v2770_v26 = vld [vmem:[%s1976_s24 + $0x170] sm:$0xff] }
  0xd2   : > { %v1677_v51 = vpop.eup %1676  ;;  %1682 = vrcp.f32 %v2728_v27  ;;  %v2738_v0 = vmul.f32 %v1673_v47, %v436_v54  ;;  %v437_v6 = vadd.f32 2.0, %v1675_v62  ;;  %v249_v53 = vmin.f32 %v2755_v19, 20.0 }
  0xd3   : > { %v1134_v50 = vmul.f32 %v1070_v31, %v2528_v33  ;;  %v1071_v40 = vmul.f32 %v1007_v23, %v2639_v18  ;;  %v880_v20 = vmul.f32 %v816_v12, %v2676_v43  ;;  %v817_v11 = vmul.f32 %v1671_v16, %v753_v29  ;;  %v2797_v31 = vld [vmem:[%s1976_s24 + $0x188] sm:$0xff]  ;;  %v2800_v23 = vld [vmem:[%s1976_s24 + $0x190] sm:$0xff] }
  0xd4   : > { %v1679_v43 = vpop.eup %1678  ;;  %v2749_v41 = vadd.f32 2.0, %v2738_v0  ;;  %v2751_v17 = vmul.f32 %v1675_v62, %v437_v6  ;;  %v438_v15 = vadd.f32 2.0, %v1677_v51  ;;  %v356_v57 = vmul.f32 1.442695, %v248_v56 }
  0xd5   : > { %v1262_v39 = vsel %vm1198_vm2, %v2528_v33, %v1134_v50  ;;  %v1135_v3 = vmul.f32 %v1071_v40, %v2563_v48  ;;  %v944_v13 = vsub.f32 2.0, %v880_v20  ;;  %v881_v18 = vmul.f32 %v817_v11, %v2693_v4 }
  0xd6   : > { %1326 = vst [vmem:[%s2160_s17 + $0x110] sm:$0xff] %v1262_v39  ;;  %v439_v21 = vadd.f32 2.0, %v1679_v43  ;;  %v1681_v4 = vpop.eup %1680  ;;  %1684 = vrcp.f32 %v2749_v41  ;;  %v2760_v30 = vadd.f32 2.0, %v2751_v17  ;;  %v2762_v25 = vmul.f32 %v1677_v51, %v438_v15 }
  0xd7   : > { %v1263_v33 = vsel %vm1199_vm3, %v2563_v48, %v1135_v3  ;;  %v1008_v55 = vmul.f32 %v944_v13, %v816_v12  ;;  %v945_v45 = vsub.f32 2.0, %v881_v18  ;;  %v690_v63 = vmul.f32 %v1681_v4, %v2725_v61 }
  0xd8   : > { %1327 = vst [vmem:[%s2160_s17 + $0x118] sm:$0xff] %v1263_v33  ;;  %v2767_v36 = vmul.f32 %v1679_v43, %v439_v21  ;;  %v1683_v59 = vpop.eup %1682  ;;  %1686 = vrcp.f32 %v2760_v30  ;;  %v2775_v7 = vadd.f32 2.0, %v2762_v25  ;;  %v250_v32 = vmin.f32 %v2770_v26, 20.0 }
  0xd9   : > { %v1072_v48 = vmul.f32 %v1008_v55, %v2663_v1  ;;  %v1009_v5 = vmul.f32 %v945_v45, %v817_v11  ;;  %v754_v24 = vsub.f32 2.0, %v690_v63  ;;  %v691_v10 = vmul.f32 %v1683_v59, %v2728_v27 }
  0xda   : > { %1688 = vrcp.f32 %v2775_v7  ;;  %v2789_v16 = vadd.f32 2.0, %v2767_v36  ;;  %vm1202_vm6 = vcmp.gt.f32.partialorder %v2605_v58, 20.0  ;;  %v358_v29 = vmul.f32 1.442695, %v249_v53 }
  0xdb   : > { %v1136_v1 = vmul.f32 %v1072_v48, %v2580_v28  ;;  %v1073_v22 = vmul.f32 %v1009_v5, %v2678_v42  ;;  %v818_v34 = vmul.f32 %v1681_v4, %v754_v24  ;;  %v755_v47 = vsub.f32 2.0, %v691_v10  ;;  %v2821_v4 = vld [vmem:[%s1976_s24 + $0x198] sm:$0xff] }
  0xdc   : > { %v1685_v12 = vpop.eup %1684  ;;  %1690 = vrcp.f32 %v2789_v16  ;;  %v251_v62 = vmin.f32 %v2782_v2, 20.0  ;;  %v360_v51 = vmul.f32 1.442695, %v250_v32  ;;  %v253_v6 = vmin.f32 %v2797_v31, 20.0 }
  0xdd   : > { %v1264_v42 = vsel %vm1200_vm4, %v2580_v28, %v1136_v1  ;;  %v1137_v8 = vmul.f32 %v1073_v22, %v2593_v44  ;;  %v252_v28 = vmin.f32 %v2785_v14, 20.0  ;;  %v882_v50 = vmul.f32 %v818_v34, %v2725_v61  ;;  %v2832_v22 = vld [vmem:[%s1976_s24 + $0x1a0] sm:$0xff] }
  0xde   : > { %1328 = vst [vmem:[%s2160_s17 + $0x120] sm:$0xff] %v1264_v42  ;;  %v819_v40 = vmul.f32 %v1683_v59, %v755_v47  ;;  %v692_v20 = vmul.f32 %v1685_v12, %v2749_v41  ;;  %v1687_v11 = vpop.eup %1686  ;;  %1692 = vpow2.f32 %v356_v57  ;;  %v254_v39 = vmin.f32 %v2800_v23, 20.0 }
  0xdf   : > { %v1265_v54 = vsel %vm1201_vm5, %v2593_v44, %v1137_v8  ;;  %v946_v3 = vsub.f32 2.0, %v882_v50  ;;  %v693_v44 = vmul.f32 %v1687_v11, %v2760_v30  ;;  %vm1203_vm7 = vcmp.gt.f32.partialorder %v2614_v38, 20.0 }
  0xe0   : > { %1329 = vst [vmem:[%s2160_s17 + $0x128] sm:$0xff] %v1265_v54  ;;  %v883_v13 = vmul.f32 %v819_v40, %v2728_v27  ;;  %v756_v18 = vsub.f32 2.0, %v692_v20  ;;  %v1689_v43 = vpop.eup %1688  ;;  %1694 = vpow2.f32 %v358_v29  ;;  %v362_v61 = vmul.f32 1.442695, %v251_v62 }
  0xe1   : > { %v2818_v15 = vmul.f32 1.442695, %v252_v28  ;;  %v1010_v33 = vmul.f32 %v946_v3, %v818_v34  ;;  %v757_v21 = vsub.f32 2.0, %v693_v44  ;;  %vm1204_vm8 = vcmp.gt.f32.partialorder %v2671_v60, 20.0 }
  0xe2   : > { %v947_v55 = vsub.f32 2.0, %v883_v13  ;;  %v820_v45 = vmul.f32 %v1685_v12, %v756_v18  ;;  %v1691_v56 = vpop.eup %1690  ;;  %v694_v27 = vmul.f32 %v1689_v43, %v2775_v7  ;;  %1696 = vpow2.f32 %v360_v51 }
  0xe3   : > { %v2825_v48 = vmul.f32 1.442695, %v253_v6  ;;  %v2827_v5 = vmul.f32 1.442695, %v254_v39  ;;  %v1074_v63 = vmul.f32 %v1010_v33, %v2719_v52  ;;  %v821_v1 = vmul.f32 %v1687_v11, %v757_v21  ;;  %v2870_v21 = vld [vmem:[%s1976_s24 + $0x1a8] sm:$0xff] }
  0xe4   : > { %v1011_v59 = vmul.f32 %v947_v55, %v819_v40  ;;  %v884_v53 = vmul.f32 %v820_v45, %v2749_v41  ;;  %v1693_v24 = vpop.eup %1692  ;;  %vm1205_vm9 = vcmp.gt.f32.partialorder %v2687_v9, 20.0  ;;  %v758_v10 = vsub.f32 2.0, %v694_v27 }
  0xe5   : > { %v695_v57 = vmul.f32 %v1691_v56, %v2789_v16  ;;  %1698 = vpow2.f32 %v362_v61  ;;  %v255_v32 = vmin.f32 %v2821_v4, 20.0  ;;  %v1138_v42 = vmul.f32 %v1074_v63, %v2605_v58 }
  0xe6   : > { %v1075_v52 = vmul.f32 %v1011_v59, %v2721_v37  ;;  %v948_v8 = vsub.f32 2.0, %v884_v53  ;;  %v885_v41 = vmul.f32 %v821_v1, %v2760_v30  ;;  %v1695_v34 = vpop.eup %1694  ;;  %v822_v47 = vmul.f32 %v1689_v43, %v758_v10  ;;  %v2882_v59 = vld [vmem:[%s1976_s24 + $0x1b0] sm:$0xff] }
  0xe7   : > { %v759_v12 = vsub.f32 2.0, %v695_v57  ;;  %v440_v29 = vadd.f32 2.0, %v1693_v24  ;;  %v256_v62 = vmin.f32 %v2832_v22, 20.0  ;;  %v1266_v28 = vsel %vm1202_vm6, %v2605_v58, %v1138_v42  ;;  %v2896_v42 = vld [vmem:[%s1976_s24 + $0x1b8] sm:$0xff] }
  0xe8   : > { %v1139_v54 = vmul.f32 %v1075_v52, %v2614_v38  ;;  %v1012_v50 = vmul.f32 %v948_v8, %v820_v45  ;;  %v949_v40 = vsub.f32 2.0, %v885_v41  ;;  %vm1206_vm10 = vcmp.gt.f32.partialorder %v2697_v35, 20.0  ;;  %v1697_v37 = vpop.eup %1696  ;;  %1330 = vst [vmem:[%s2160_s17 + $0x130] sm:$0xff] %v1266_v28 }
  0xe9   : > { %v886_v30 = vmul.f32 %v822_v47, %v2775_v7  ;;  %v823_v20 = vmul.f32 %v1691_v56, %v759_v12  ;;  %v2848_v11 = vmul.f32 %v1693_v24, %v440_v29  ;;  %v441_v51 = vadd.f32 2.0, %v1695_v34  ;;  %v2915_v12 = vld [vmem:[%s1976_s24 + $0x1c0] sm:$0xff] }
  0xea   : > { %v1267_v6 = vsel %vm1203_vm7, %v2614_v38, %v1139_v54  ;;  %v1076_v58 = vmul.f32 %v1012_v50, %v2738_v0  ;;  %v1013_v39 = vmul.f32 %v949_v40, %v821_v1  ;;  %v442_v3 = vadd.f32 2.0, %v1697_v37  ;;  %v2921_v50 = vld [vmem:[%s1976_s24 + $0x1c8] sm:$0xff] }
  0xeb   : > { %v1699_v13 = vpop.eup %1698  ;;  %1331 = vst [vmem:[%s2160_s17 + $0x138] sm:$0xff] %v1267_v6  ;;  %v950_v18 = vsub.f32 2.0, %v886_v30  ;;  %v887_v44 = vmul.f32 %v823_v20, %v2789_v16  ;;  %v2857_v7 = vadd.f32 2.0, %v2848_v11  ;;  %v2859_v43 = vmul.f32 %v1695_v34, %v441_v51 }
  0xec   : > { %v1140_v61 = vmul.f32 %v1076_v58, %v2671_v60  ;;  %v1077_v38 = vmul.f32 %v1013_v39, %v2751_v17  ;;  %v2863_v0 = vmul.f32 %v1697_v37, %v442_v3  ;;  %v443_v33 = vadd.f32 2.0, %v1699_v13 }
  0xed   : > { %v1014_v55 = vmul.f32 %v950_v18, %v822_v47  ;;  %v951_v45 = vsub.f32 2.0, %v887_v44  ;;  %1700 = vrcp.f32 %v2857_v7  ;;  %v2867_v16 = vadd.f32 2.0, %v2859_v43 }
  0xee   : > { %v1268_v56 = vsel %vm1204_vm8, %v2671_v60, %v1140_v61  ;;  %v1141_v17 = vmul.f32 %v1077_v38, %v2687_v9  ;;  %v2877_v27 = vadd.f32 2.0, %v2863_v0  ;;  %v2879_v63 = vmul.f32 %v1699_v13, %v443_v33 }
  0xef   : > { %1332 = vst [vmem:[%s2160_s17 + $0x140] sm:$0xff] %v1268_v56  ;;  %v1078_v53 = vmul.f32 %v1014_v55, %v2762_v25  ;;  %v1015_v1 = vmul.f32 %v951_v45, %v823_v20  ;;  %1702 = vrcp.f32 %v2867_v16  ;;  %v370_v24 = vmul.f32 1.442695, %v255_v32 }
  0xf0   : > { %v1269_v60 = vsel %vm1205_vm9, %v2687_v9, %v1141_v17  ;;  %1704 = vrcp.f32 %v2877_v27  ;;  %v2892_v10 = vadd.f32 2.0, %v2879_v63  ;;  %v257_v57 = vmin.f32 %v2870_v21, 20.0 }
  0xf1   : > { %1333 = vst [vmem:[%s2160_s17 + $0x148] sm:$0xff] %v1269_v60  ;;  %v1142_v25 = vmul.f32 %v1078_v53, %v2697_v35  ;;  %v1079_v32 = vmul.f32 %v1015_v1, %v2767_v36  ;;  %1706 = vpow2.f32 %v2818_v15  ;;  %v258_v9 = vmin.f32 %v2882_v59, 20.0 }
  0xf2   : > { %vm1207_vm11 = vcmp.gt.f32.partialorder %v2702_v49, 20.0  ;;  %1708 = vrcp.f32 %v2892_v10  ;;  %v372_v52 = vmul.f32 1.442695, %v256_v62  ;;  %v259_v36 = vmin.f32 %v2896_v42, 20.0 }
  0xf3   : > { %v1701_v8 = vpop.eup %1700  ;;  %v1270_v41 = vsel %vm1206_vm10, %v2697_v35, %v1142_v25  ;;  %v1143_v34 = vmul.f32 %v1079_v32, %v2702_v49  ;;  %1710 = vpow2.f32 %v2825_v48  ;;  %v374_v47 = vmul.f32 1.442695, %v257_v57 }
  0xf4   : > { %1334 = vst [vmem:[%s2160_s17 + $0x150] sm:$0xff] %v1270_v41  ;;  %v696_v15 = vmul.f32 %v1701_v8, %v2857_v7  ;;  %1712 = vpow2.f32 %v2827_v5  ;;  %v376_v35 = vmul.f32 1.442695, %v258_v9  ;;  %v378_v5 = vmul.f32 1.442695, %v259_v36 }
  0xf5   : > { %v1703_v29 = vpop.eup %1702  ;;  %v1271_v62 = vsel %vm1207_vm11, %v2702_v49, %v1143_v34  ;;  %1714 = vpow2.f32 %v370_v24  ;;  %v260_v30 = vmin.f32 %v2915_v12, 20.0  ;;  %vm1208_vm12 = vcmp.gt.f32.partialorder %v2744_v46, 20.0 }
  0xf6   : > { %v1705_v28 = vpop.eup %1704  ;;  %1335 = vst [vmem:[%s2160_s17 + $0x158] sm:$0xff] %v1271_v62  ;;  %v760_v54 = vsub.f32 2.0, %v696_v15  ;;  %v697_v48 = vmul.f32 %v1703_v29, %v2867_v16  ;;  %1716 = vpow2.f32 %v372_v52  ;;  %v261_v13 = vmin.f32 %v2921_v50, 20.0 }
  0xf7   : > { %v1707_v40 = vpop.eup %1706  ;;  %v698_v37 = vmul.f32 %v1705_v28, %v2877_v27  ;;  %1718 = vpow2.f32 %v374_v47  ;;  %vm1209_vm13 = vcmp.gt.f32.partialorder %v2755_v19, 20.0  ;;  %vm1210_vm14 = vcmp.gt.f32.partialorder %v2770_v26, 20.0 }
  0xf8   : > { %v1709_v20 = vpop.eup %1708  ;;  %v824_v51 = vmul.f32 %v1701_v8, %v760_v54  ;;  %v761_v6 = vsub.f32 2.0, %v697_v48  ;;  %v444_v49 = vadd.f32 2.0, %v1707_v40  ;;  %1720 = vpow2.f32 %v376_v35 }
  0xf9   : > { %v1711_v58 = vpop.eup %1710  ;;  %v762_v39 = vsub.f32 2.0, %v698_v37  ;;  %v699_v3 = vmul.f32 %v1709_v20, %v2892_v10  ;;  %1722 = vpow2.f32 %v378_v5  ;;  %vm1211_vm15 = vcmp.gt.f32.partialorder %v2782_v2, 20.0 }
  0xfa   : > { %v1713_v18 = vpop.eup %1712  ;;  %v888_v44 = vmul.f32 %v824_v51, %v2857_v7  ;;  %v825_v61 = vmul.f32 %v1703_v29, %v761_v6  ;;  %v2929_v38 = vmul.f32 %v1707_v40, %v444_v49  ;;  %v445_v33 = vadd.f32 2.0, %v1711_v58  ;;  %v2966_v49 = vld [vmem:[%s1976_s24 + $0x1d0] sm:$0xff] }
  0xfb   : > { %v1715_v55 = vpop.eup %1714  ;;  %v826_v45 = vmul.f32 %v1705_v28, %v762_v39  ;;  %v763_v56 = vsub.f32 2.0, %v699_v3  ;;  %v446_v17 = vadd.f32 2.0, %v1713_v18  ;;  %v380_v6 = vmul.f32 1.442695, %v260_v30 }
  0xfc   : > { %v952_v53 = vsub.f32 2.0, %v888_v44  ;;  %v889_v1 = vmul.f32 %v825_v61, %v2867_v16  ;;  %v2935_v24 = vadd.f32 2.0, %v2929_v38  ;;  %v2937_v7 = vmul.f32 %v1711_v58, %v445_v33  ;;  %v1717_v60 = vpop.eup %1716 }
  0xfd   : > { %v890_v57 = vmul.f32 %v826_v45, %v2877_v27  ;;  %v827_v25 = vmul.f32 %v1709_v20, %v763_v56  ;;  %v2940_v32 = vmul.f32 %v1713_v18, %v446_v17  ;;  %v447_v9 = vadd.f32 2.0, %v1715_v55  ;;  %v1719_v52 = vpop.eup %1718 }
  0xfe   : > { %v1016_v8 = vmul.f32 %v952_v53, %v824_v51  ;;  %v953_v41 = vsub.f32 2.0, %v889_v1  ;;  %1724 = vrcp.f32 %v2935_v24  ;;  %v2945_v16 = vadd.f32 2.0, %v2937_v7  ;;  %v1721_v34 = vpop.eup %1720 }
  0xff   : > { %v954_v36 = vsub.f32 2.0, %v890_v57  ;;  %v891_v15 = vmul.f32 %v827_v25, %v2892_v10  ;;  %v2949_v27 = vadd.f32 2.0, %v2940_v32  ;;  %v2951_v47 = vmul.f32 %v1715_v55, %v447_v9  ;;  %v1723_v28 = vpop.eup %1722 }
 0x100   : > { %v1080_v29 = vmul.f32 %v1016_v8, %v2848_v11  ;;  %v1017_v62 = vmul.f32 %v953_v41, %v825_v61  ;;  %1726 = vrcp.f32 %v2945_v16  ;;  %v448_v35 = vadd.f32 2.0, %v1717_v60 }
 0x101   : > { %v1018_v54 = vmul.f32 %v954_v36, %v826_v45  ;;  %v955_v48 = vsub.f32 2.0, %v891_v15  ;;  %1728 = vrcp.f32 %v2949_v27  ;;  %v2957_v10 = vadd.f32 2.0, %v2951_v47 }
 0x102   : > { %v1144_v40 = vmul.f32 %v1080_v29, %v2744_v46  ;;  %v1081_v37 = vmul.f32 %v1017_v62, %v2859_v43  ;;  %v2961_v5 = vmul.f32 %v1717_v60, %v448_v35  ;;  %v449_v11 = vadd.f32 2.0, %v1719_v52 }
 0x103   : > { %v1082_v20 = vmul.f32 %v1018_v54, %v2863_v0  ;;  %v1019_v51 = vmul.f32 %v955_v48, %v827_v25  ;;  %1730 = vrcp.f32 %v2957_v10  ;;  %v450_v61 = vadd.f32 2.0, %v1721_v34 }
 0x104   : > { %v1725_v58 = vpop.eup %1724  ;;  %v1272_v39 = vsel %vm1208_vm12, %v2744_v46, %v1144_v40  ;;  %v1145_v3 = vmul.f32 %v1081_v37, %v2755_v19  ;;  %v2973_v43 = vadd.f32 2.0, %v2961_v5  ;;  %v2975_v18 = vmul.f32 %v1719_v52, %v449_v11 }
 0x105   : > { %1336 = vst [vmem:[%s2160_s17 + $0x160] sm:$0xff] %v1272_v39  ;;  %v1146_v0 = vmul.f32 %v1082_v20, %v2770_v26  ;;  %v1083_v30 = vmul.f32 %v1019_v51, %v2879_v63  ;;  %v700_v44 = vmul.f32 %v1725_v58, %v2935_v24  ;;  %v262_v45 = vmin.f32 %v2966_v49, 20.0 }
 0x106   : > { %v1727_v33 = vpop.eup %1726  ;;  %v1273_v46 = vsel %vm1209_vm13, %v2755_v19, %v1145_v3  ;;  %1732 = vrcp.f32 %v2973_v43  ;;  %v2986_v55 = vadd.f32 2.0, %v2975_v18  ;;  %v2998_v60 = vmul.f32 %v1721_v34, %v450_v61 }
 0x107   : > { %v1729_v56 = vpop.eup %1728  ;;  %1337 = vst [vmem:[%s2160_s17 + $0x168] sm:$0xff] %v1273_v46  ;;  %v1274_v63 = vsel %vm1210_vm14, %v2770_v26, %v1146_v0  ;;  %v1147_v17 = vmul.f32 %v1083_v30, %v2782_v2  ;;  %v764_v53 = vsub.f32 2.0, %v700_v44  ;;  %v701_v1 = vmul.f32 %v1727_v33, %v2945_v16 }
 0x108   : > { %1338 = vst [vmem:[%s2160_s17 + $0x170] sm:$0xff] %v1274_v63  ;;  %v702_v19 = vmul.f32 %v1729_v56, %v2949_v27  ;;  %1734 = vrcp.f32 %v2986_v55  ;;  %v451_v57 = vadd.f32 2.0, %v1723_v28  ;;  %v382_v8 = vmul.f32 1.442695, %v261_v13 }
 0x109   : > { %v1731_v25 = vpop.eup %1730  ;;  %v1275_v9 = vsel %vm1211_vm15, %v2782_v2, %v1147_v17  ;;  %v828_v52 = vmul.f32 %v1725_v58, %v764_v53  ;;  %v765_v26 = vsub.f32 2.0, %v701_v1  ;;  %vm1212_vm0 = vcmp.gt.f32.partialorder %v2785_v14, 20.0 }
 0x10a   : > { %1339 = vst [vmem:[%s2160_s17 + $0x178] sm:$0xff] %v1275_v9  ;;  %v766_v41 = vsub.f32 2.0, %v702_v19  ;;  %v703_v36 = vmul.f32 %v1731_v25, %v2957_v10  ;;  %v3009_v34 = vadd.f32 2.0, %v2998_v60  ;;  %v3011_v15 = vmul.f32 %v1723_v28, %v451_v57 }
 0x10b   : > { %v892_v29 = vmul.f32 %v828_v52, %v2935_v24  ;;  %v829_v2 = vmul.f32 %v1727_v33, %v765_v26  ;;  %1736 = vpow2.f32 %v380_v6  ;;  %v384_v62 = vmul.f32 1.442695, %v262_v45  ;;  %v3022_v24 = vld [vmem:[%s1976_s24 + $0x1d8] sm:$0xff] }
 0x10c   : > { %v1733_v35 = vpop.eup %1732  ;;  %vm1213_vm1 = vcmp.gt.f32.partialorder %v2797_v31, 20.0  ;;  %v830_v13 = vmul.f32 %v1729_v56, %v766_v41  ;;  %v767_v54 = vsub.f32 2.0, %v703_v36  ;;  %1738 = vrcp.f32 %v3009_v34 }
 0x10d   : > { %v3017_v48 = vadd.f32 2.0, %v3011_v15  ;;  %v956_v40 = vsub.f32 2.0, %v892_v29  ;;  %v893_v37 = vmul.f32 %v829_v2, %v2945_v16  ;;  %v704_v28 = vmul.f32 %v1733_v35, %v2973_v43 }
 0x10e   : > { %1740 = vpow2.f32 %v382_v8  ;;  %v1735_v11 = vpop.eup %1734  ;;  %v894_v20 = vmul.f32 %v830_v13, %v2949_v27  ;;  %vm1214_vm2 = vcmp.gt.f32.partialorder %v2800_v23, 20.0  ;;  %v831_v51 = vmul.f32 %v1731_v25, %v767_v54 }
 0x10f   : > { %1742 = vrcp.f32 %v3017_v48  ;;  %v1020_v6 = vmul.f32 %v956_v40, %v828_v52  ;;  %v957_v58 = vsub.f32 2.0, %v893_v37  ;;  %vm1215_vm3 = vcmp.gt.f32.partialorder %v2821_v4, 20.0 }
 0x110   : > { %v768_v39 = vsub.f32 2.0, %v704_v28  ;;  %v705_v16 = vmul.f32 %v1735_v11, %v2986_v55  ;;  %v958_v3 = vsub.f32 2.0, %v894_v20  ;;  %v895_v0 = vmul.f32 %v831_v51, %v2957_v10 }
 0x111   : > { %1744 = vpow2.f32 %v384_v62  ;;  %v263_v30 = vmin.f32 %v3022_v24, 20.0  ;;  %v1737_v44 = vpop.eup %1736  ;;  %v1084_v27 = vmul.f32 %v1020_v6, %v2929_v38  ;;  %v1021_v61 = vmul.f32 %v957_v58, %v829_v2 }
 0x112   : > { %v832_v33 = vmul.f32 %v1733_v35, %v768_v39  ;;  %v769_v46 = vsub.f32 2.0, %v705_v16  ;;  %v1739_v45 = vpop.eup %1738  ;;  %v1022_v56 = vmul.f32 %v958_v3, %v830_v13  ;;  %v959_v63 = vsub.f32 2.0, %v895_v0  ;;  %v3074_v3 = vld [vmem:[%s1976_s24 + $0x1e0] sm:$0xff] }
 0x113   : > { %vm1216_vm4 = vcmp.gt.f32.partialorder %v2832_v22, 20.0  ;;  %v452_v17 = vadd.f32 2.0, %v1737_v44  ;;  %v386_v53 = vmul.f32 1.442695, %v263_v30  ;;  %v1148_v10 = vmul.f32 %v1084_v27, %v2785_v14 }
 0x114   : > { %v1741_v1 = vpop.eup %1740  ;;  %v1085_v19 = vmul.f32 %v1021_v61, %v2937_v7  ;;  %v896_v57 = vmul.f32 %v832_v33, %v2973_v43  ;;  %v833_v25 = vmul.f32 %v1735_v11, %v769_v46  ;;  %v1086_v9 = vmul.f32 %v1022_v56, %v2940_v32  ;;  %v3092_v46 = vld [vmem:[%s1976_s24 + $0x1f0] sm:$0xff] }
 0x115   : > { %v1743_v38 = vpop.eup %1742  ;;  %v1023_v52 = vmul.f32 %v959_v63, %v831_v51  ;;  %v706_v26 = vmul.f32 %v1739_v45, %v3009_v34  ;;  %v3038_v8 = vmul.f32 %v1737_v44, %v452_v17  ;;  %v1276_v41 = vsel %vm1212_vm0, %v2785_v14, %v1148_v10 }
 0x116   : > { %v1149_v36 = vmul.f32 %v1085_v19, %v2797_v31  ;;  %v960_v29 = vsub.f32 2.0, %v896_v57  ;;  %v897_v7 = vmul.f32 %v833_v25, %v2986_v55  ;;  %1340 = vst [vmem:[%s2160_s17 + $0x180] sm:$0xff] %v1276_v41  ;;  %v1150_v32 = vmul.f32 %v1086_v9, %v2800_v23 }
 0x117   : > { %v1745_v43 = vpop.eup %1744  ;;  %v1087_v2 = vmul.f32 %v1023_v52, %v2951_v47  ;;  %v770_v62 = vsub.f32 2.0, %v706_v26  ;;  %v707_v35 = vmul.f32 %v1743_v38, %v3017_v48  ;;  %v3053_v40 = vadd.f32 2.0, %v3038_v8 }
 0x118   : > { %v1277_v13 = vsel %vm1213_vm1, %v2797_v31, %v1149_v36  ;;  %v1024_v14 = vmul.f32 %v960_v29, %v832_v33  ;;  %v961_v54 = vsub.f32 2.0, %v897_v7  ;;  %v1278_v55 = vsel %vm1214_vm2, %v2800_v23, %v1150_v32 }
 0x119   : > { %1341 = vst [vmem:[%s2160_s17 + $0x188] sm:$0xff] %v1277_v13  ;;  %v1151_v47 = vmul.f32 %v1087_v2, %v2821_v4  ;;  %v834_v37 = vmul.f32 %v1739_v45, %v770_v62  ;;  %v771_v28 = vsub.f32 2.0, %v707_v35  ;;  %1746 = vrcp.f32 %v3053_v40  ;;  %v3095_v45 = vld [vmem:[%s1976_s24 + $0x1f8] sm:$0xff] }
 0x11a   : > { %1342 = vst [vmem:[%s2160_s17 + $0x190] sm:$0xff] %v1278_v55  ;;  %v1088_v11 = vmul.f32 %v1024_v14, %v2961_v5  ;;  %v1025_v31 = vmul.f32 %v961_v54, %v833_v25  ;;  %v453_v20 = vadd.f32 2.0, %v1741_v1  ;;  %vm1217_vm5 = vcmp.gt.f32.partialorder %v2870_v21, 20.0 }
 0x11b   : > { %v1279_v51 = vsel %vm1215_vm3, %v2821_v4, %v1151_v47  ;;  %v898_v23 = vmul.f32 %v834_v37, %v3009_v34  ;;  %v835_v6 = vmul.f32 %v1743_v38, %v771_v28  ;;  %v454_v16 = vadd.f32 2.0, %v1745_v43  ;;  %v3079_v34 = vld [vmem:[%s1976_s24 + $0x1e8] sm:$0xff] }
 0x11c   : > { %1343 = vst [vmem:[%s2160_s17 + $0x198] sm:$0xff] %v1279_v51  ;;  %v1152_v58 = vmul.f32 %v1088_v11, %v2832_v22  ;;  %v1089_v5 = vmul.f32 %v1025_v31, %v2975_v18  ;;  %v3071_v39 = vmul.f32 %v1741_v1, %v453_v20  ;;  %vm1218_vm6 = vcmp.gt.f32.partialorder %v2882_v59, 20.0 }
 0x11d   : > { %v962_v0 = vsub.f32 2.0, %v898_v23  ;;  %v899_v4 = vmul.f32 %v835_v6, %v3017_v48  ;;  %1748 = vpow2.f32 %v386_v53  ;;  %v3086_v27 = vmul.f32 %v1745_v43, %v454_v16 }
 0x11e   : > { %v1280_v30 = vsel %vm1216_vm4, %v2832_v22, %v1152_v58  ;;  %v1153_v18 = vmul.f32 %v1089_v5, %v2870_v21  ;;  %v581_v44 = vadd.f32 2.0, %v3071_v39  ;;  %vm1219_vm7 = vcmp.gt.f32.partialorder %v2896_v42, 20.0 }
 0x11f   : > { %1344 = vst [vmem:[%s2160_s17 + $0x1a0] sm:$0xff] %v1280_v30  ;;  %v1026_v61 = vmul.f32 %v962_v0, %v834_v37  ;;  %v963_v33 = vsub.f32 2.0, %v899_v4  ;;  %v264_v48 = vmin.f32 %v3074_v3, 20.0  ;;  %v1747_v56 = vpop.eup %1746  ;;  %v582_v63 = vadd.f32 2.0, %v3086_v27 }
 0x120   : > { %v1281_v22 = vsel %vm1217_vm5, %v2870_v21, %v1153_v18  ;;  %1750 = vrcp.f32 %v581_v44  ;;  %v265_v17 = vmin.f32 %v3079_v34, 20.0  ;;  %v708_v10 = vmul.f32 %v1747_v56, %v3053_v40 }
 0x121   : > { %1345 = vst [vmem:[%s2160_s17 + $0x1a8] sm:$0xff] %v1281_v22  ;;  %v1090_v53 = vmul.f32 %v1026_v61, %v2998_v60  ;;  %v1027_v1 = vmul.f32 %v963_v33, %v835_v6  ;;  %v388_v19 = vmul.f32 1.442695, %v264_v48  ;;  %1752 = vrcp.f32 %v582_v63 }
 0x122   : > { %v390_v57 = vmul.f32 1.442695, %v265_v17  ;;  %v266_v25 = vmin.f32 %v3092_v46, 20.0  ;;  %v267_v38 = vmin.f32 %v3095_v45, 20.0  ;;  %v772_v26 = vsub.f32 2.0, %v708_v10 }
 0x123   : > { %v1749_v21 = vpop.eup %1748  ;;  %v1154_v9 = vmul.f32 %v1090_v53, %v2882_v59  ;;  %v1091_v52 = vmul.f32 %v1027_v1, %v3011_v15  ;;  %1754 = vpow2.f32 %v388_v19  ;;  %vm1220_vm8 = vcmp.gt.f32.partialorder %v2915_v12, 20.0 }
 0x124   : > { %v455_v41 = vadd.f32 2.0, %v1749_v21  ;;  %1756 = vpow2.f32 %v390_v57  ;;  %v392_v60 = vmul.f32 1.442695, %v266_v25  ;;  %v394_v36 = vmul.f32 1.442695, %v267_v38 }
 0x125   : > { %v1282_v29 = vsel %vm1218_vm6, %v2882_v59, %v1154_v9  ;;  %v1155_v7 = vmul.f32 %v1091_v52, %v2896_v42  ;;  %v836_v43 = vmul.f32 %v1747_v56, %v772_v26  ;;  %vm1221_vm9 = vcmp.gt.f32.partialorder %v2921_v50, 20.0 }
 0x126   : > { %v1751_v32 = vpop.eup %1750  ;;  %1346 = vst [vmem:[%s2160_s17 + $0x1b0] sm:$0xff] %v1282_v29  ;;  %v3114_v2 = vmul.f32 %v1749_v21, %v455_v41  ;;  %1758 = vpow2.f32 %v392_v60  ;;  %vm1222_vm10 = vcmp.gt.f32.partialorder %v2966_v49, 20.0  ;;  %vm1223_vm11 = vcmp.gt.f32.partialorder %v3022_v24, 20.0 }
 0x127   : > { %v1283_v15 = vsel %vm1219_vm7, %v2896_v42, %v1155_v7  ;;  %v900_v62 = vmul.f32 %v836_v43, %v3053_v40  ;;  %v709_v35 = vmul.f32 %v1751_v32, %v581_v44  ;;  %1760 = vpow2.f32 %v394_v36  ;;  %v1753_v13 = vpop.eup %1752 }
 0x128   : > { %1347 = vst [vmem:[%s2160_s17 + $0x1b8] sm:$0xff] %v1283_v15  ;;  %v583_v59 = vadd.f32 2.0, %v3114_v2  ;;  %v710_v47 = vmul.f32 %v1753_v13, %v582_v63  ;;  %vm1224_vm12 = vcmp.gt.f32.partialorder %v3074_v3, 20.0  ;;  %vm1225_vm13 = vcmp.gt.f32.partialorder %v3079_v34, 20.0 }
 0x129   : > { %v1755_v14 = vpop.eup %1754  ;;  %v964_v54 = vsub.f32 2.0, %v900_v62  ;;  %v773_v55 = vsub.f32 2.0, %v709_v35  ;;  %vm1226_vm14 = vcmp.gt.f32.partialorder %v3092_v46, 20.0  ;;  %vm1227_vm15 = vcmp.gt.f32.partialorder %v3095_v45, 20.0 }
 0x12a   : > { %v1757_v37 = vpop.eup %1756  ;;  %1762 = vrcp.f32 %v583_v59  ;;  %v456_v28 = vadd.f32 2.0, %v1755_v14  ;;  %v774_v20 = vsub.f32 2.0, %v710_v47 }
 0x12b   : > { %v1028_v11 = vmul.f32 %v964_v54, %v836_v43  ;;  %v837_v31 = vmul.f32 %v1751_v32, %v773_v55  ;;  %v457_v51 = vadd.f32 2.0, %v1757_v37 }
 0x12c   : > { %v1759_v42 = vpop.eup %1758  ;;  %v3122_v23 = vmul.f32 %v1755_v14, %v456_v28  ;;  %v838_v5 = vmul.f32 %v1753_v13, %v774_v20 }
 0x12d   : > { %v1761_v40 = vpop.eup %1760  ;;  %v1092_v6 = vmul.f32 %v1028_v11, %v3038_v8  ;;  %v901_v58 = vmul.f32 %v837_v31, %v581_v44  ;;  %v3125_v16 = vmul.f32 %v1757_v37, %v457_v51  ;;  %v458_v4 = vadd.f32 2.0, %v1759_v42 }
 0x12e   : > { %v584_v0 = vadd.f32 2.0, %v3122_v23  ;;  %v459_v30 = vadd.f32 2.0, %v1761_v40  ;;  %v902_v33 = vmul.f32 %v838_v5, %v582_v63 }
 0x12f   : > { %v1156_v18 = vmul.f32 %v1092_v6, %v2915_v12  ;;  %v965_v61 = vsub.f32 2.0, %v901_v58  ;;  %v585_v48 = vadd.f32 2.0, %v3125_v16  ;;  %v3131_v8 = vmul.f32 %v1759_v42, %v458_v4 }
 0x130   : > { %v1763_v56 = vpop.eup %1762  ;;  %1764 = vrcp.f32 %v584_v0  ;;  %v3133_v44 = vmul.f32 %v1761_v40, %v459_v30  ;;  %v966_v53 = vsub.f32 2.0, %v902_v33 }
 0x131   : > { %v1284_v22 = vsel %vm1220_vm8, %v2915_v12, %v1156_v18  ;;  %v1029_v17 = vmul.f32 %v965_v61, %v837_v31  ;;  %v711_v1 = vmul.f32 %v1763_v56, %v583_v59  ;;  %1766 = vrcp.f32 %v585_v48 }
 0x132   : > { %1348 = vst [vmem:[%s2160_s17 + $0x1c0] sm:$0xff] %v1284_v22  ;;  %v586_v10 = vadd.f32 2.0, %v3131_v8  ;;  %v587_v19 = vadd.f32 2.0, %v3133_v44  ;;  %v1030_v57 = vmul.f32 %v966_v53, %v838_v5 }
 0x133   : > { %v1093_v63 = vmul.f32 %v1029_v17, %v3071_v39  ;;  %v775_v25 = vsub.f32 2.0, %v711_v1 }
 0x134   : > { %1768 = vrcp.f32 %v586_v10  ;;  %v1094_v12 = vmul.f32 %v1030_v57, %v3086_v27 }
 0x135   : > { %v1157_v38 = vmul.f32 %v1093_v63, %v2921_v50  ;;  %v839_v21 = vmul.f32 %v1763_v56, %v775_v25  ;;  %1770 = vrcp.f32 %v587_v19 }
 0x136   : > { %v1765_v9 = vpop.eup %1764  ;;  %v1158_v39 = vmul.f32 %v1094_v12, %v2966_v49 }
 0x137   : > { %v1285_v52 = vsel %vm1221_vm9, %v2921_v50, %v1157_v38  ;;  %v903_v26 = vmul.f32 %v839_v21, %v583_v59  ;;  %v712_v41 = vmul.f32 %v1765_v9, %v584_v0  ;;  %v1767_v60 = vpop.eup %1766 }
 0x138   : > { %1349 = vst [vmem:[%s2160_s17 + $0x1c8] sm:$0xff] %v1285_v52  ;;  %v1286_v36 = vsel %vm1222_vm10, %v2966_v49, %v1158_v39  ;;  %v713_v43 = vmul.f32 %v1767_v60, %v585_v48 }
 0x139   : > { %v967_v29 = vsub.f32 2.0, %v903_v26  ;;  %v776_v7 = vsub.f32 2.0, %v712_v41  ;;  %1350 = vst [vmem:[%s2160_s17 + $0x1d0] sm:$0xff] %v1286_v36 }
 0x13a   : > { %v1769_v27 = vpop.eup %1768  ;;  %v777_v35 = vsub.f32 2.0, %v713_v43 }
 0x13b   : > { %v1771_v32 = vpop.eup %1770  ;;  %v1031_v15 = vmul.f32 %v967_v29, %v839_v21  ;;  %v840_v62 = vmul.f32 %v1765_v9, %v776_v7  ;;  %v714_v13 = vmul.f32 %v1769_v27, %v586_v10 }
 0x13c   : > { %v715_v14 = vmul.f32 %v1771_v32, %v587_v19  ;;  %v841_v54 = vmul.f32 %v1767_v60, %v777_v35 }
 0x13d   : > { %v1095_v50 = vmul.f32 %v1031_v15, %v3114_v2  ;;  %v904_v59 = vmul.f32 %v840_v62, %v584_v0  ;;  %v778_v55 = vsub.f32 2.0, %v714_v13 }
 0x13e   : > { %v779_v49 = vsub.f32 2.0, %v715_v14  ;;  %v905_v28 = vmul.f32 %v841_v54, %v585_v48 }
 0x13f   : > { %v1159_v47 = vmul.f32 %v1095_v50, %v3022_v24  ;;  %v968_v37 = vsub.f32 2.0, %v904_v59  ;;  %v842_v11 = vmul.f32 %v1769_v27, %v778_v55 }
 0x140   : > { %v843_v31 = vmul.f32 %v1771_v32, %v779_v49  ;;  %v969_v42 = vsub.f32 2.0, %v905_v28 }
 0x141   : > { %v1287_v20 = vsel %vm1223_vm11, %v3022_v24, %v1159_v47  ;;  %v1032_v51 = vmul.f32 %v968_v37, %v840_v62  ;;  %v906_v40 = vmul.f32 %v842_v11, %v586_v10 }
 0x142   : > { %1351 = vst [vmem:[%s2160_s17 + $0x1d8] sm:$0xff] %v1287_v20  ;;  %v907_v2 = vmul.f32 %v843_v31, %v587_v19  ;;  %v1033_v58 = vmul.f32 %v969_v42, %v841_v54 }
 0x143   : > { %v1096_v6 = vmul.f32 %v1032_v51, %v3122_v23  ;;  %v970_v5 = vsub.f32 2.0, %v906_v40 }
 0x144   : > { %v971_v0 = vsub.f32 2.0, %v907_v2  ;;  %v1097_v4 = vmul.f32 %v1033_v58, %v3125_v16 }
 0x145   : > { %v1160_v24 = vmul.f32 %v1096_v6, %v3074_v3  ;;  %v1034_v30 = vmul.f32 %v970_v5, %v842_v11 }
 0x146   : > { %v1035_v18 = vmul.f32 %v971_v0, %v843_v31  ;;  %v1161_v61 = vmul.f32 %v1097_v4, %v3079_v34 }
 0x147   : > { %v1288_v23 = vsel %vm1224_vm12, %v3074_v3, %v1160_v24  ;;  %v1098_v33 = vmul.f32 %v1034_v30, %v3131_v8 }
 0x148   : > { %1352 = vst [vmem:[%s2160_s17 + $0x1e0] sm:$0xff] %v1288_v23  ;;  %v1099_v16 = vmul.f32 %v1035_v18, %v3133_v44  ;;  %v1289_v48 = vsel %vm1225_vm13, %v3079_v34, %v1161_v61 }
 0x149   : > { %v1162_v56 = vmul.f32 %v1098_v33, %v3092_v46  ;;  %1353 = vst [vmem:[%s2160_s17 + $0x1e8] sm:$0xff] %v1289_v48 }
 0x14a   : > { %v1163_v3 = vmul.f32 %v1099_v16, %v3095_v45 }
 0x14b   : > { %v1290_v8 = vsel %vm1226_vm14, %v3092_v46, %v1162_v56 }
 0x14c   : > { %1354 = vst [vmem:[%s2160_s17 + $0x1f0] sm:$0xff] %v1290_v8  ;;  %v1291_v22 = vsel %vm1227_vm15, %v3095_v45, %v1163_v3 }
 0x14d   : > { %1355 = vst [vmem:[%s2160_s17 + $0x1f8] sm:$0xff] %v1291_v22 }
 0x14e   : > { %1829 = shalt.err (!%p1826_p4)
}
 0x14f   : > { %s1872_s16 = smov 512   ;;  %s1873_s20 = smov 32  }
 0x150   : > { %1468 = dma.vmem_to_hbm [thread:$0]  (%p1934_p11), %s1371_s10, 8192, %s1373_s29, %s1357_s30, %s1872_s16, %s1872_s16, %s1873_s20  }
 0x151 PF: > { %s1387_s21 = sand.u32 1, %s1856_s6   ;;  %p3231_p7 = scmp.ge.s32.totalorder %s1868_s9, 2 }
 0x152   : > { %s1388_s22 = scalar_lea.sflag [#allocation4], %s1387_s21 }
 0x153   : > { %p1475_p5 = pnand %p3231_p7, %p1938_p12 }
 0x155   : > { %p1476_p8 = pneg %p1475_p5 }
 0x157   : > { %1851 = dma.done.wait (%p1476_p8), %s1388_s22, 8192  }
 0x158   : > { %1853 = vsyncadd (%p1476_p8), %s1388_s22, 4294959104  ;;  %p14_p10 = scmp.ge.s32.totalorder %s1909_s12, 4   ;;  %s3232_s6 = smov %s1860_s7 }
 0x159   : > { %s3233_s7 = smov %s1864_s8  ;;  %s3234_s8 = smov %s1921_s15 }
 0x15a   : > { %s3235_s9 = smov %s1909_s12  ;;  %16 = sbr.rel (!%p14_p10) target bundleno = 5 (0x5), region = 69 }
 0x15f   :  { %1394 = vsyncpa [#allocation3], 1 }
 0x160   :  { %1396 = vsyncpa [#allocation3 + $0x1], 1 }
 0x161   :  { %1397 = vsyncpa [#allocation4], 1 }
 0x162   :  { %1399 = vsyncpa [#allocation4 + $0x1], 1 }

</bundles_post_ra>
